<compile_context>
chip_gen: v7x
topology: tpu7x:2x2x1
jax: 0.10.0
libtpu: 0.0.40
codegen_flags: <defaults>
</compile_context>

<pallas_src>
import jax
import jax.numpy as jnp
from jax.experimental import pallas as pl
from jax.experimental.pallas import tpu as pltpu

# ---- model hyperparameters (from the PyTorch module) ----
IN_LEN = 46            # input_size
C1_OUT, K1 = 8, 8      # Conv1d(1, 8, 8)
C2_OUT, K2 = 16, 4     # Conv1d(8, 16, 4)
L1 = IN_LEN - K1 + 1   # 39
P1 = L1 // 2           # 19
L2 = P1 - K2 + 1       # 16
P2 = L2 // 2           # 8
F1 = L1 * C1_OUT       # 312  conv1 features, order (l, c)
F1P = 384              # F1 zero-padded to a multiple of 128
F2 = L2 * C2_OUT       # 256  conv2 features, order (l2, c2)
FLAT = C2_OUT * P2     # 128  PyTorch flatten order (c2, p)
HID = 32
NEW_FEAT = 4           # num_new_features
NUM_CLASSES = 3
BN_EPS = 1e-5

OUT_W = 8              # narrow head output slab (full-array last dim -> legal block)
OUT_OFF = 0            # logits lanes [0, 3)
FEAT_OFF = 3           # features lanes [3, 7)   (disjoint from logits)
TN_MAX = 512           # max batch-tile rows (multiple of 8)


def _round_up(a, m):
    return (a + m - 1) // m * m


# --------------------------------------------------------------------------
# bf16x3 helpers (3-pass f32 matmul emulation: drops only the lo*lo term)
# --------------------------------------------------------------------------
def _split_bf16(a):
    hi = a.astype(jnp.bfloat16)
    lo = (a - hi.astype(jnp.float32)).astype(jnp.bfloat16)
    return hi, lo


def _dot3(a_hi, a_lo, b_hi, b_lo):
    f32 = jnp.float32
    return (jnp.dot(a_hi, b_hi, preferred_element_type=f32)
            + jnp.dot(a_hi, b_lo, preferred_element_type=f32)
            + jnp.dot(a_lo, b_hi, preferred_element_type=f32))


# --------------------------------------------------------------------------
# Kernels
# --------------------------------------------------------------------------
def conv_kernel(n_ref, x_ref, w1hi_ref, w1lo_ref, b1_ref,
                w2hi_ref, w2lo_ref, b2_ref, p2_ref, gp_ref, stats_ref):
    """Conv trunk: conv1+ReLU, (pool1+conv2)+ReLU, pool2+flatten — all MXU matmuls
    in bf16x3 — plus masked per-tile BN partial sums (sum, sum of squares)."""
    f32 = jnp.float32
    x_hi, x_lo = _split_bf16(x_ref[...])                                  # (tn, 46)
    h = _dot3(x_hi, x_lo, w1hi_ref[...], w1lo_ref[...])                   # (tn, 384)
    h = jnp.maximum(h + b1_ref[...], 0.0)                                 # padded cols stay 0
    h_hi, h_lo = _split_bf16(h)
    g = _dot3(h_hi, h_lo, w2hi_ref[...], w2lo_ref[...])                   # (tn, 256)
    g = jnp.maximum(g + b2_ref[...], 0.0)
    g_hi, g_lo = _split_bf16(g)
    p2 = p2_ref[...]                                                      # exact 0 / 0.5 in bf16
    gp = (jnp.dot(g_hi, p2, preferred_element_type=f32)
          + jnp.dot(g_lo, p2, preferred_element_type=f32))                # (tn, 128)
    gp_ref[...] = gp

    # BN partial sums over the *valid* rows of this tile (padded rows masked out).
    tn = gp.shape[0]
    valid = n_ref[0] - pl.program_id(0) * tn
    rows = jax.lax.broadcasted_iota(jnp.int32, gp.shape, 0)
    gp_m = jnp.where(rows < valid, gp, 0.0)
    s = jnp.sum(gp_m, axis=0, keepdims=True)                              # (1, 128)
    ss = jnp.sum(gp_m * gp_m, axis=0, keepdims=True)                      # (1, 128)
    stats_ref[...] = jnp.concatenate(
        [s, ss, jnp.zeros((6, gp.shape[1]), f32)], axis=0)                # (8, 128)


def head_kernel(gp_ref, wl_ref, bl_ref, wl1_ref, bl1_ref, wo_ref, bo_ref, out_ref):
    """(BN-folded) linear(128->32) + zero-padded linear1/out -> one 8-lane slab."""
    hp = jax.lax.Precision.HIGHEST                                        # tiny matmuls; keep exact
    f32 = jnp.float32
    f = jnp.dot(gp_ref[...], wl_ref[...], precision=hp,
                preferred_element_type=f32) + bl_ref[...]                 # (tn, 32)
    fp = jnp.dot(f, wl1_ref[...], precision=hp,
                 preferred_element_type=f32) + bl1_ref[...]               # (tn, 8): feat lanes 3..6
    op = jnp.dot(fp, wo_ref[...], precision=hp,
                 preferred_element_type=f32) + bo_ref[...]                # (tn, 8): logits lanes 0..2
    out_ref[...] = op + fp                                                # disjoint lanes -> safe pack


# --------------------------------------------------------------------------
# Wrapper-side weight preprocessing (trace-time only)
# --------------------------------------------------------------------------
def _build_conv_mats(params):
    w1 = params["w1"].astype(jnp.float32)     # (8, 1, 8)   (out_c, in_c, k)
    b1 = params["b1"].astype(jnp.float32)     # (8,)
    w2 = params["w2"].astype(jnp.float32)     # (16, 8, 4)  (out_c, in_c, k)
    b2 = params["b2"].astype(jnp.float32)     # (16,)

    # conv1 Toeplitz: (46,) -> (312,), feature f1 = l*8 + c ; zero-pad to 384.
    k1 = jnp.arange(IN_LEN)[:, None] - jnp.arange(L1)[None, :]            # (46, 39)
    valid1 = (k1 >= 0) & (k1 < K1)
    w1_kc = jnp.transpose(w1[:, 0, :], (1, 0))                            # (k, c)
    w1t = jnp.where(valid1[:, :, None], w1_kc[jnp.clip(k1, 0, K1 - 1)], 0.0)
    w1t = jnp.pad(w1t.reshape(IN_LEN, F1), ((0, 0), (0, F1P - F1)))       # (46, 384)
    b1row = jnp.pad(jnp.tile(b1[None, :], (L1, 1)).reshape(1, F1),
                    ((0, 0), (0, F1P - F1)))                              # (1, 384)

    # AvgPool1d(2) fused into conv2: (312,) -> (256,), feature f2 = l2*16 + c2.
    k2 = jnp.arange(L1)[:, None] // 2 - jnp.arange(L2)[None, :]           # (39, 16)
    valid2 = (k2 >= 0) & (k2 < K2)
    w2_kic = jnp.transpose(w2, (2, 1, 0))                                 # (k, c1, c2)
    g4 = jnp.where(valid2[:, :, None, None],
                   w2_kic[jnp.clip(k2, 0, K2 - 1)], 0.0) * 0.5            # (39,16,8,16)
    pw2 = jnp.transpose(g4, (0, 2, 1, 3)).reshape(F1, F2)                 # (312, 256)
    pw2 = jnp.pad(pw2, ((0, F1P - F1), (0, 0)))                           # (384, 256)
    b2row = jnp.tile(b2[None, :], (L2, 1)).reshape(1, F2)                 # (1, 256)

    # AvgPool1d(2) + PyTorch flatten: (256,) -> (128,), feature f = c2*8 + p.
    pos = (jnp.arange(L2)[:, None] // 2 == jnp.arange(P2)[None, :]).astype(jnp.float32)
    eye_c = jnp.eye(C2_OUT, dtype=jnp.float32)
    pool2 = (0.5 * pos[:, None, None, :] * eye_c[None, :, :, None]).reshape(F2, FLAT)

    w1hi, w1lo = _split_bf16(w1t)
    w2hi, w2lo = _split_bf16(pw2)
    pool2_bf16 = pool2.astype(jnp.bfloat16)   # 0.0 / 0.5 are exact in bf16
    return w1hi, w1lo, b1row, w2hi, w2lo, b2row, pool2_bf16


def _build_head_mats(params, mean, var):
    hp = jax.lax.Precision.HIGHEST
    gamma = params["gamma"].astype(jnp.float32)
    beta = params["beta"].astype(jnp.float32)
    scale = gamma * jax.lax.rsqrt(var + BN_EPS)                           # (128,)
    shift = beta - mean * scale                                           # (128,)

    wl = params["wl"].astype(jnp.float32).T                               # (128, 32)
    bl = params["bl"].astype(jnp.float32)                                 # (32,)
    wl_eff = wl * scale[:, None]                                          # fold BN scale
    bl_eff = (jnp.dot(shift, wl, precision=hp) + bl).reshape(1, HID)      # fold BN shift

    wl1_pad = jnp.zeros((HID, OUT_W), jnp.float32)
    wl1_pad = wl1_pad.at[:, FEAT_OFF:FEAT_OFF + NEW_FEAT].set(
        params["wl1"].astype(jnp.float32).T)
    bl1_pad = jnp.zeros((1, OUT_W), jnp.float32)
    bl1_pad = bl1_pad.at[0, FEAT_OFF:FEAT_OFF + NEW_FEAT].set(
        params["bl1"].astype(jnp.float32))
    wo_pad = jnp.zeros((OUT_W, OUT_W), jnp.float32)
    wo_pad = wo_pad.at[FEAT_OFF:FEAT_OFF + NEW_FEAT,
                       OUT_OFF:OUT_OFF + NUM_CLASSES].set(
        params["wo"].astype(jnp.float32).T)
    bo_pad = jnp.zeros((1, OUT_W), jnp.float32)
    bo_pad = bo_pad.at[0, OUT_OFF:OUT_OFF + NUM_CLASSES].set(
        params["bo"].astype(jnp.float32))
    return wl_eff, bl_eff, wl1_pad, bl1_pad, wo_pad, bo_pad


# --------------------------------------------------------------------------
# Forward pass
# --------------------------------------------------------------------------
def net_forward(x_ncw, params):
    """x_ncw: (N, 1, 46) float32 (PyTorch NCW). Returns (out (N,3), feat (N,4))."""
    n = x_ncw.shape[0]
    # Big tiles (low per-step overhead) but always >=2 tiles at large batch so
    # both v7x TensorCores get work on the "parallel" batch axis.
    half = -(-n // 2)
    tn = min(TN_MAX, _round_up(max(half, 1), 8))
    n_pad = _round_up(n, tn)
    n_tiles = n_pad // tn
    grid = (n_tiles,)
    cparams = pltpu.CompilerParams(dimension_semantics=("parallel",))

    x2d = x_ncw.reshape(n, IN_LEN).astype(jnp.float32)
    x2d = jnp.pad(x2d, ((0, n_pad - n), (0, 0)))
    nvalid = jnp.array([n], jnp.int32)   # scalar-prefetch: masks padded rows in BN stats

    w1hi, w1lo, b1row, w2hi, w2lo, b2row, pool2 = _build_conv_mats(params)

    conv_cost = pl.CostEstimate(
        flops=2 * n_pad * (IN_LEN * F1P + F1P * F2 + F2 * FLAT),
        transcendentals=0,
        bytes_accessed=(4 * n_pad * (IN_LEN + FLAT)
                        + 2 * 2 * (IN_LEN * F1P + F1P * F2) + 2 * F2 * FLAT
                        + 4 * (F1P + F2) + 4 * n_tiles * 8 * FLAT),
    )

    # Pass 1: conv trunk (bf16x3 MXU matmuls) + masked per-tile BN partial sums.
    gp, stats = pl.pallas_call(
        conv_kernel,
        out_shape=(jax.ShapeDtypeStruct((n_pad, FLAT), jnp.float32),
                   jax.ShapeDtypeStruct((n_tiles * 8, FLAT), jnp.float32)),
        grid_spec=pltpu.PrefetchScalarGridSpec(
            num_scalar_prefetch=1,
            grid=grid,
            in_specs=[
                pl.BlockSpec((tn, IN_LEN), lambda i, *_: (i, 0)),
                pl.BlockSpec((IN_LEN, F1P), lambda i, *_: (0, 0)),
                pl.BlockSpec((IN_LEN, F1P), lambda i, *_: (0, 0)),
                pl.BlockSpec((1, F1P), lambda i, *_: (0, 0)),
                pl.BlockSpec((F1P, F2), lambda i, *_: (0, 0)),
                pl.BlockSpec((F1P, F2), lambda i, *_: (0, 0)),
                pl.BlockSpec((1, F2), lambda i, *_: (0, 0)),
                pl.BlockSpec((F2, FLAT), lambda i, *_: (0, 0)),
            ],
            out_specs=[
                pl.BlockSpec((tn, FLAT), lambda i, *_: (i, 0)),
                pl.BlockSpec((8, FLAT), lambda i, *_: (i, 0)),
            ],
        ),
        compiler_params=cparams,
        cost_estimate=conv_cost,
    )(nvalid, x2d, w1hi, w1lo, b1row, w2hi, w2lo, b2row, pool2)

    # BatchNorm1d(128) training-mode batch statistics from the in-kernel partial
    # sums (padded rows already masked out) — no extra HBM pass over gp.
    # TODO(synk): running_mean/running_var buffer updates (training side effect) omitted.
    sums = stats.reshape(n_tiles, 8, FLAT).sum(axis=0)
    inv_n = jnp.float32(1.0 / n)
    mean = sums[0] * inv_n
    var = jnp.maximum(sums[1] * inv_n - mean * mean, 0.0)    # biased, as PyTorch normalization

    wl_eff, bl_eff, wl1_pad, bl1_pad, wo_pad, bo_pad = _build_head_mats(params, mean, var)

    head_cost = pl.CostEstimate(
        flops=2 * n_pad * (FLAT * HID + HID * OUT_W + OUT_W * OUT_W),
        transcendentals=0,
        bytes_accessed=4 * (n_pad * (FLAT + OUT_W) + FLAT * HID + HID
                            + HID * OUT_W + OUT_W + OUT_W * OUT_W + OUT_W),
    )

    # Pass 2: BN-folded linear stack; narrow 8-lane output slab per tile.
    combined = pl.pallas_call(
        head_kernel,
        out_shape=jax.ShapeDtypeStruct((n_pad, OUT_W), jnp.float32),
        grid=grid,
        in_specs=[
            pl.BlockSpec((tn, FLAT), lambda i: (i, 0)),
            pl.BlockSpec((FLAT, HID), lambda i: (0, 0)),
            pl.BlockSpec((1, HID), lambda i: (0, 0)),
            pl.BlockSpec((HID, OUT_W), lambda i: (0, 0)),
            pl.BlockSpec((1, OUT_W), lambda i: (0, 0)),
            pl.BlockSpec((OUT_W, OUT_W), lambda i: (0, 0)),
            pl.BlockSpec((1, OUT_W), lambda i: (0, 0)),
        ],
        out_specs=pl.BlockSpec((tn, OUT_W), lambda i: (i, 0)),
        compiler_params=cparams,
        cost_estimate=head_cost,
    )(gp, wl_eff, bl_eff, wl1_pad, bl1_pad, wo_pad, bo_pad)

    out = combined[:n, OUT_OFF:OUT_OFF + NUM_CLASSES]
    feat = combined[:n, FEAT_OFF:FEAT_OFF + NEW_FEAT]
    return out, feat


# --------------------------------------------------------------------------
# Parameter init + pure-JAX reference (mirrors the PyTorch forward)
# --------------------------------------------------------------------------
def init_params(key):
    """Deterministic PyTorch-shaped parameters (PyTorch-style uniform init)."""
    ks = jax.random.split(key, 10)

    def u(k, shape, fan_in):
        bound = 1.0 / jnp.sqrt(jnp.float32(fan_in))
        return jax.random.uniform(k, shape, jnp.float32, -bound, bound)

    return dict(
        w1=u(ks[0], (C1_OUT, 1, K1), 1 * K1),            # (out, in, k)
        b1=u(ks[1], (C1_OUT,), 1 * K1),
        w2=u(ks[2], (C2_OUT, C1_OUT, K2), C1_OUT * K2),
        b2=u(ks[3], (C2_OUT,), C1_OUT * K2),
        gamma=jnp.ones((FLAT,), jnp.float32),
        beta=jnp.zeros((FLAT,), jnp.float32),
        wl=u(ks[4], (HID, FLAT), FLAT),                  # (out, in)
        bl=u(ks[5], (HID,), FLAT),
        wl1=u(ks[6], (NEW_FEAT, HID), HID),
        bl1=u(ks[7], (NEW_FEAT,), HID),
        wo=u(ks[8], (NUM_CLASSES, NEW_FEAT), NEW_FEAT),
        bo=u(ks[9], (NUM_CLASSES,), NEW_FEAT),
    )


def reference_forward(x_ncw, params):
    """Pure-JAX f32/HIGHEST reference reproducing the PyTorch forward (training-mode BN)."""
    hp = jax.lax.Precision.HIGHEST

    def conv1d(x, w, b):
        dn = jax.lax.conv_dimension_numbers(x.shape, w.shape, ("NCH", "OIH", "NCH"))
        y = jax.lax.conv_general_dilated(x, w, (1,), "VALID",
                                         dimension_numbers=dn, precision=hp)
        return y + b[None, :, None]

    n = x_ncw.shape[0]
    h = jnp.maximum(conv1d(x_ncw, params["w1"], params["b1"]), 0.0)
    h = 0.5 * (h[:, :, 0:2 * P1:2] + h[:, :, 1:2 * P1:2])
    g = jnp.maximum(conv1d(h, params["w2"], params["b2"]), 0.0)
    g = 0.5 * (g[:, :, 0:2 * P2:2] + g[:, :, 1:2 * P2:2])
    flat = g.reshape(n, -1)
    mean = jnp.mean(flat, axis=0)
    var = jnp.mean((flat - mean) ** 2, axis=0)
    fn = (flat - mean) / jnp.sqrt(var + BN_EPS) * params["gamma"] + params["beta"]
    f = jnp.dot(fn, params["wl"].T, precision=hp) + params["bl"]
    feat = jnp.dot(f, params["wl1"].T, precision=hp) + params["bl1"]
    out = jnp.dot(feat, params["wo"].T, precision=hp) + params["bo"]
    return out, feat


if __name__ == "__main__":
    key = jax.random.PRNGKey(0)
    pkey, xkey, xkey2 = jax.random.split(key, 3)
    params = init_params(pkey)

    fwd = jax.jit(net_forward)

    # Trunk matmuls run as bf16x3 (perf-review item 1) while the reference is
    # f32/HIGHEST; BatchNorm can amplify the small residual (especially at
    # batch=2), so the comparison tolerance is 2e-3.
    TOL = dict(atol=2e-3, rtol=2e-3)

    # Small-shape check (batch=2), matching the PyTorch module input (N, 1, 46).
    x = jax.random.normal(xkey, (2, 1, IN_LEN), jnp.float32)
    out, feat = fwd(x, params)
    out = jax.block_until_ready(out)
    feat = jax.block_until_ready(feat)
    ref_out, ref_feat = reference_forward(x, params)
    assert out.shape == (2, NUM_CLASSES) and feat.shape == (2, NEW_FEAT)
    assert jnp.allclose(out, ref_out, **TOL)
    assert jnp.allclose(feat, ref_feat, **TOL)

    # Multi-tile check: exercises the 2-tile batch grid, in-kernel masked BN
    # partial sums, and cross-tile BatchNorm statistics.
    xb = jax.random.normal(xkey2, (300, 1, IN_LEN), jnp.float32)
    out_b, feat_b = fwd(xb, params)
    out_b = jax.block_until_ready(out_b)
    feat_b = jax.block_until_ready(feat_b)
    ref_out_b, ref_feat_b = reference_forward(xb, params)
    assert jnp.allclose(out_b, ref_out_b, **TOL)
    assert jnp.allclose(feat_b, ref_feat_b, **TOL)

    print("KERNEL_OK")
</pallas_src>

<mosaic_0001>
module attributes {stable_mosaic.version = 11 : i64} {
  func.func @conv_kernel(%arg0: i32, %arg1: memref<1xi32, #tpu.memory_space<smem>>, %arg2: memref<8x46xf32, #tpu.memory_space<vmem>>, %arg3: memref<46x384xbf16, #tpu.memory_space<vmem>>, %arg4: memref<46x384xbf16, #tpu.memory_space<vmem>>, %arg5: memref<1x384xf32, #tpu.memory_space<vmem>>, %arg6: memref<384x256xbf16, #tpu.memory_space<vmem>>, %arg7: memref<384x256xbf16, #tpu.memory_space<vmem>>, %arg8: memref<1x256xf32, #tpu.memory_space<vmem>>, %arg9: memref<256x128xbf16, #tpu.memory_space<vmem>>, %arg10: memref<8x128xf32, #tpu.memory_space<vmem>>, %arg11: memref<8x128xf32, #tpu.memory_space<vmem>>) attributes {dimension_semantics = [#tpu.dimension_semantics<parallel>], iteration_bounds = array<i64: 1>, scalar_prefetch = 1 : i64, scratch_operands = 0 : i64, tpu.core_type = #tpu.core_type<tc>, window_params = [{transform_indices = @transform_0, window_bounds = array<i64: 8, 46>}, {pipeline_mode = #tpu.pipeline_mode<synchronous>, transform_indices = @transform_1, window_bounds = array<i64: 46, 384>}, {pipeline_mode = #tpu.pipeline_mode<synchronous>, transform_indices = @transform_2, window_bounds = array<i64: 46, 384>}, {pipeline_mode = #tpu.pipeline_mode<synchronous>, transform_indices = @transform_3, window_bounds = array<i64: 1, 384>}, {pipeline_mode = #tpu.pipeline_mode<synchronous>, transform_indices = @transform_4, window_bounds = array<i64: 384, 256>}, {pipeline_mode = #tpu.pipeline_mode<synchronous>, transform_indices = @transform_5, window_bounds = array<i64: 384, 256>}, {pipeline_mode = #tpu.pipeline_mode<synchronous>, transform_indices = @transform_6, window_bounds = array<i64: 1, 256>}, {pipeline_mode = #tpu.pipeline_mode<synchronous>, transform_indices = @transform_7, window_bounds = array<i64: 256, 128>}, {transform_indices = @transform_8, window_bounds = array<i64: 8, 128>}, {transform_indices = @transform_9, window_bounds = array<i64: 8, 128>}]} {
    %c0 = arith.constant 0 : index
    %c0_0 = arith.constant 0 : index
    %0 = vector.load %arg2[%c0, %c0_0] : memref<8x46xf32, #tpu.memory_space<vmem>>, vector<8x46xf32>
    %1 = arith.truncf %0 : vector<8x46xf32> to vector<8x46xbf16>
    %2 = arith.extf %1 : vector<8x46xbf16> to vector<8x46xf32>
    %3 = arith.subf %0, %2 : vector<8x46xf32>
    %4 = arith.truncf %3 : vector<8x46xf32> to vector<8x46xbf16>
    %c0_1 = arith.constant 0 : index
    %c0_2 = arith.constant 0 : index
    %5 = vector.load %arg3[%c0_1, %c0_2] : memref<46x384xbf16, #tpu.memory_space<vmem>>, vector<46x384xbf16>
    %c0_3 = arith.constant 0 : index
    %c0_4 = arith.constant 0 : index
    %6 = vector.load %arg4[%c0_3, %c0_4] : memref<46x384xbf16, #tpu.memory_space<vmem>>, vector<46x384xbf16>
    %cst = arith.constant dense<0.000000e+00> : vector<8x384xf32>
    %7 = tpu.matmul %1, %5, %cst {dimension_numbers = #tpu.dot_dimension_numbers<[1], [0], [0], [1], [0, 0, 1, 1], [], []>} : vector<8x46xbf16>, vector<46x384xbf16>, vector<8x384xf32> -> vector<8x384xf32>
    %cst_5 = arith.constant dense<0.000000e+00> : vector<8x384xf32>
    %8 = tpu.matmul %1, %6, %cst_5 {dimension_numbers = #tpu.dot_dimension_numbers<[1], [0], [0], [1], [0, 0, 1, 1], [], []>} : vector<8x46xbf16>, vector<46x384xbf16>, vector<8x384xf32> -> vector<8x384xf32>
    %9 = arith.addf %7, %8 : vector<8x384xf32>
    %cst_6 = arith.constant dense<0.000000e+00> : vector<8x384xf32>
    %10 = tpu.matmul %4, %5, %cst_6 {dimension_numbers = #tpu.dot_dimension_numbers<[1], [0], [0], [1], [0, 0, 1, 1], [], []>} : vector<8x46xbf16>, vector<46x384xbf16>, vector<8x384xf32> -> vector<8x384xf32>
    %11 = arith.addf %9, %10 : vector<8x384xf32>
    %c0_7 = arith.constant 0 : index
    %c0_8 = arith.constant 0 : index
    %12 = vector.load %arg5[%c0_7, %c0_8] : memref<1x384xf32, #tpu.memory_space<vmem>>, vector<1x384xf32>
    %13 = vector.broadcast %12 : vector<1x384xf32> to vector<8x384xf32>
    %14 = arith.addf %11, %13 : vector<8x384xf32>
    %cst_9 = arith.constant 0.000000e+00 : f32
    %15 = vector.broadcast %cst_9 : f32 to vector<8x384xf32>
    %16 = arith.maximumf %14, %15 : vector<8x384xf32>
    %17 = arith.truncf %16 : vector<8x384xf32> to vector<8x384xbf16>
    %18 = arith.extf %17 : vector<8x384xbf16> to vector<8x384xf32>
    %19 = arith.subf %16, %18 : vector<8x384xf32>
    %20 = arith.truncf %19 : vector<8x384xf32> to vector<8x384xbf16>
    %c0_10 = arith.constant 0 : index
    %c0_11 = arith.constant 0 : index
    %21 = vector.load %arg6[%c0_10, %c0_11] : memref<384x256xbf16, #tpu.memory_space<vmem>>, vector<384x256xbf16>
    %c0_12 = arith.constant 0 : index
    %c0_13 = arith.constant 0 : index
    %22 = vector.load %arg7[%c0_12, %c0_13] : memref<384x256xbf16, #tpu.memory_space<vmem>>, vector<384x256xbf16>
    %cst_14 = arith.constant dense<0.000000e+00> : vector<8x256xf32>
    %23 = tpu.matmul %17, %21, %cst_14 {dimension_numbers = #tpu.dot_dimension_numbers<[1], [0], [0], [1], [0, 0, 1, 1], [], []>} : vector<8x384xbf16>, vector<384x256xbf16>, vector<8x256xf32> -> vector<8x256xf32>
    %cst_15 = arith.constant dense<0.000000e+00> : vector<8x256xf32>
    %24 = tpu.matmul %17, %22, %cst_15 {dimension_numbers = #tpu.dot_dimension_numbers<[1], [0], [0], [1], [0, 0, 1, 1], [], []>} : vector<8x384xbf16>, vector<384x256xbf16>, vector<8x256xf32> -> vector<8x256xf32>
    %25 = arith.addf %23, %24 : vector<8x256xf32>
    %cst_16 = arith.constant dense<0.000000e+00> : vector<8x256xf32>
    %26 = tpu.matmul %20, %21, %cst_16 {dimension_numbers = #tpu.dot_dimension_numbers<[1], [0], [0], [1], [0, 0, 1, 1], [], []>} : vector<8x384xbf16>, vector<384x256xbf16>, vector<8x256xf32> -> vector<8x256xf32>
    %27 = arith.addf %25, %26 : vector<8x256xf32>
    %c0_17 = arith.constant 0 : index
    %c0_18 = arith.constant 0 : index
    %28 = vector.load %arg8[%c0_17, %c0_18] : memref<1x256xf32, #tpu.memory_space<vmem>>, vector<1x256xf32>
    %29 = vector.broadcast %28 : vector<1x256xf32> to vector<8x256xf32>
    %30 = arith.addf %27, %29 : vector<8x256xf32>
    %cst_19 = arith.constant 0.000000e+00 : f32
    %31 = vector.broadcast %cst_19 : f32 to vector<8x256xf32>
    %32 = arith.maximumf %30, %31 : vector<8x256xf32>
    %33 = arith.truncf %32 : vector<8x256xf32> to vector<8x256xbf16>
    %34 = arith.extf %33 : vector<8x256xbf16> to vector<8x256xf32>
    %35 = arith.subf %32, %34 : vector<8x256xf32>
    %36 = arith.truncf %35 : vector<8x256xf32> to vector<8x256xbf16>
    %c0_20 = arith.constant 0 : index
    %c0_21 = arith.constant 0 : index
    %37 = vector.load %arg9[%c0_20, %c0_21] : memref<256x128xbf16, #tpu.memory_space<vmem>>, vector<256x128xbf16>
    %cst_22 = arith.constant dense<0.000000e+00> : vector<8x128xf32>
    %38 = tpu.matmul %33, %37, %cst_22 {dimension_numbers = #tpu.dot_dimension_numbers<[1], [0], [0], [1], [0, 0, 1, 1], [], []>} : vector<8x256xbf16>, vector<256x128xbf16>, vector<8x128xf32> -> vector<8x128xf32>
    %cst_23 = arith.constant dense<0.000000e+00> : vector<8x128xf32>
    %39 = tpu.matmul %36, %37, %cst_23 {dimension_numbers = #tpu.dot_dimension_numbers<[1], [0], [0], [1], [0, 0, 1, 1], [], []>} : vector<8x256xbf16>, vector<256x128xbf16>, vector<8x128xf32> -> vector<8x128xf32>
    %40 = arith.addf %38, %39 : vector<8x128xf32>
    %c0_24 = arith.constant 0 : index
    %c0_25 = arith.constant 0 : index
    %41 = vector.load %arg10[%c0_24, %c0_25] : memref<8x128xf32, #tpu.memory_space<vmem>>, vector<8x128xf32>
    tpu.vector_store %arg10[%c0_24, %c0_25], %40 {strides = array<i32>} : memref<8x128xf32, #tpu.memory_space<vmem>>, vector<8x128xf32>,
    %c0_26 = arith.constant 0 : index
    %42 = memref.load %arg1[%c0_26] : memref<1xi32, #tpu.memory_space<smem>>
    %c8_i32 = arith.constant 8 : i32
    %43 = arith.muli %arg0, %c8_i32 : i32
    %44 = arith.subi %42, %43 : i32
    %45 = tpu.iota {dimensions = array<i32: 0>} : vector<8x128xi32>
    %46 = vector.broadcast %44 : i32 to vector<8x128xi32>
    %47 = arith.cmpi slt, %45, %46 : vector<8x128xi32>
    %cst_27 = arith.constant 0.000000e+00 : f32
    %48 = vector.broadcast %cst_27 : f32 to vector<8x128xf32>
    %49 = arith.select %47, %40, %48 : vector<8x128xi1>, vector<8x128xf32>
    %cst_28 = arith.constant dense<0.000000e+00> : vector<128xf32>
    %50 = vector.multi_reduction <add>, %49, %cst_28 [0] : vector<8x128xf32> to vector<128xf32>
    %51 = vector.shape_cast %50 : vector<128xf32> to vector<1x128xf32>
    %52 = arith.mulf %49, %49 : vector<8x128xf32>
    %cst_29 = arith.constant dense<0.000000e+00> : vector<128xf32>
    %53 = vector.multi_reduction <add>, %52, %cst_29 [0] : vector<8x128xf32> to vector<128xf32>
    %54 = vector.shape_cast %53 : vector<128xf32> to vector<1x128xf32>
    %cst_30 = arith.constant 0.000000e+00 : f32
    %55 = vector.broadcast %cst_30 : f32 to vector<6x128xf32>
    %56 = tpu.concatenate %51, %54, %55 in 0 : vector<1x128xf32>, vector<1x128xf32>, vector<6x128xf32> -> vector<8x128xf32>
    %c0_31 = arith.constant 0 : index
    %c0_32 = arith.constant 0 : index
    %57 = vector.load %arg11[%c0_31, %c0_32] : memref<8x128xf32, #tpu.memory_space<vmem>>, vector<8x128xf32>
    tpu.vector_store %arg11[%c0_31, %c0_32], %56 {strides = array<i32>} : memref<8x128xf32, #tpu.memory_space<vmem>>, vector<8x128xf32>,
    return
  }
  func.func @transform_0(%arg0: i32, %arg1: memref<1xi32, #tpu.memory_space<smem>>) -> (i32, i32) {
    %c0_i32 = arith.constant 0 : i32
    %c0_i32_0 = arith.constant 0 : i32
    return %arg0, %c0_i32 : i32, i32
  }
  func.func @transform_1(%arg0: i32, %arg1: memref<1xi32, #tpu.memory_space<smem>>) -> (i32, i32) {
    %c0_i32 = arith.constant 0 : i32
    %c0_i32_0 = arith.constant 0 : i32
    %c0_i32_1 = arith.constant 0 : i32
    return %c0_i32, %c0_i32_0 : i32, i32
  }
  func.func @transform_2(%arg0: i32, %arg1: memref<1xi32, #tpu.memory_space<smem>>) -> (i32, i32) {
    %c0_i32 = arith.constant 0 : i32
    %c0_i32_0 = arith.constant 0 : i32
    %c0_i32_1 = arith.constant 0 : i32
    return %c0_i32, %c0_i32_0 : i32, i32
  }
  func.func @transform_3(%arg0: i32, %arg1: memref<1xi32, #tpu.memory_space<smem>>) -> (i32, i32) {
    %c0_i32 = arith.constant 0 : i32
    %c0_i32_0 = arith.constant 0 : i32
    %c0_i32_1 = arith.constant 0 : i32
    return %c0_i32, %c0_i32_0 : i32, i32
  }
  func.func @transform_4(%arg0: i32, %arg1: memref<1xi32, #tpu.memory_space<smem>>) -> (i32, i32) {
    %c0_i32 = arith.constant 0 : i32
    %c0_i32_0 = arith.constant 0 : i32
    %c0_i32_1 = arith.constant 0 : i32
    return %c0_i32, %c0_i32_0 : i32, i32
  }
  func.func @transform_5(%arg0: i32, %arg1: memref<1xi32, #tpu.memory_space<smem>>) -> (i32, i32) {
    %c0_i32 = arith.constant 0 : i32
    %c0_i32_0 = arith.constant 0 : i32
    %c0_i32_1 = arith.constant 0 : i32
    return %c0_i32, %c0_i32_0 : i32, i32
  }
  func.func @transform_6(%arg0: i32, %arg1: memref<1xi32, #tpu.memory_space<smem>>) -> (i32, i32) {
    %c0_i32 = arith.constant 0 : i32
    %c0_i32_0 = arith.constant 0 : i32
    %c0_i32_1 = arith.constant 0 : i32
    return %c0_i32, %c0_i32_0 : i32, i32
  }
  func.func @transform_7(%arg0: i32, %arg1: memref<1xi32, #tpu.memory_space<smem>>) -> (i32, i32) {
    %c0_i32 = arith.constant 0 : i32
    %c0_i32_0 = arith.constant 0 : i32
    %c0_i32_1 = arith.constant 0 : i32
    return %c0_i32, %c0_i32_0 : i32, i32
  }
  func.func @transform_8(%arg0: i32, %arg1: memref<1xi32, #tpu.memory_space<smem>>) -> (i32, i32) {
    %c0_i32 = arith.constant 0 : i32
    %c0_i32_0 = arith.constant 0 : i32
    return %arg0, %c0_i32 : i32, i32
  }
  func.func @transform_9(%arg0: i32, %arg1: memref<1xi32, #tpu.memory_space<smem>>) -> (i32, i32) {
    %c0_i32 = arith.constant 0 : i32
    %c0_i32_0 = arith.constant 0 : i32
    return %arg0, %c0_i32 : i32, i32
  }
}

module attributes {stable_mosaic.version = 11 : i64} {
  func.func @head_kernel(%arg0: i32, %arg1: memref<8x128xf32, #tpu.memory_space<vmem>>, %arg2: memref<128x32xf32, #tpu.memory_space<vmem>>, %arg3: memref<1x32xf32, #tpu.memory_space<vmem>>, %arg4: memref<32x8xf32, #tpu.memory_space<vmem>>, %arg5: memref<1x8xf32, #tpu.memory_space<vmem>>, %arg6: memref<8x8xf32, #tpu.memory_space<vmem>>, %arg7: memref<1x8xf32, #tpu.memory_space<vmem>>, %arg8: memref<8x8xf32, #tpu.memory_space<vmem>>) attributes {dimension_semantics = [#tpu.dimension_semantics<parallel>], iteration_bounds = array<i64: 1>, scalar_prefetch = 0 : i64, scratch_operands = 0 : i64, tpu.core_type = #tpu.core_type<tc>, window_params = [{transform_indices = @transform_0, window_bounds = array<i64: 8, 128>}, {pipeline_mode = #tpu.pipeline_mode<synchronous>, transform_indices = @transform_1, window_bounds = array<i64: 128, 32>}, {pipeline_mode = #tpu.pipeline_mode<synchronous>, transform_indices = @transform_2, window_bounds = array<i64: 1, 32>}, {pipeline_mode = #tpu.pipeline_mode<synchronous>, transform_indices = @transform_3, window_bounds = array<i64: 32, 8>}, {pipeline_mode = #tpu.pipeline_mode<synchronous>, transform_indices = @transform_4, window_bounds = array<i64: 1, 8>}, {pipeline_mode = #tpu.pipeline_mode<synchronous>, transform_indices = @transform_5, window_bounds = array<i64: 8, 8>}, {pipeline_mode = #tpu.pipeline_mode<synchronous>, transform_indices = @transform_6, window_bounds = array<i64: 1, 8>}, {transform_indices = @transform_7, window_bounds = array<i64: 8, 8>}]} {
    %c0 = arith.constant 0 : index
    %c0_0 = arith.constant 0 : index
    %0 = vector.load %arg1[%c0, %c0_0] : memref<8x128xf32, #tpu.memory_space<vmem>>, vector<8x128xf32>
    %c0_1 = arith.constant 0 : index
    %c0_2 = arith.constant 0 : index
    %1 = vector.load %arg2[%c0_1, %c0_2] : memref<128x32xf32, #tpu.memory_space<vmem>>, vector<128x32xf32>
    %cst = arith.constant dense<0.000000e+00> : vector<8x32xf32>
    %2 = tpu.matmul %0, %1, %cst {dimension_numbers = #tpu.dot_dimension_numbers<[1], [0], [0], [1], [0, 0, 1, 1], [], []>, precision = #tpu.contract_precision<fp32>} : vector<8x128xf32>, vector<128x32xf32>, vector<8x32xf32> -> vector<8x32xf32>
    %c0_3 = arith.constant 0 : index
    %c0_4 = arith.constant 0 : index
    %3 = vector.load %arg3[%c0_3, %c0_4] : memref<1x32xf32, #tpu.memory_space<vmem>>, vector<1x32xf32>
    %4 = vector.broadcast %3 : vector<1x32xf32> to vector<8x32xf32>
    %5 = arith.addf %2, %4 : vector<8x32xf32>
    %c0_5 = arith.constant 0 : index
    %c0_6 = arith.constant 0 : index
    %6 = vector.load %arg4[%c0_5, %c0_6] : memref<32x8xf32, #tpu.memory_space<vmem>>, vector<32x8xf32>
    %cst_7 = arith.constant dense<0.000000e+00> : vector<8x8xf32>
    %7 = tpu.matmul %5, %6, %cst_7 {dimension_numbers = #tpu.dot_dimension_numbers<[1], [0], [0], [1], [0, 0, 1, 1], [], []>, precision = #tpu.contract_precision<fp32>} : vector<8x32xf32>, vector<32x8xf32>, vector<8x8xf32> -> vector<8x8xf32>
    %c0_8 = arith.constant 0 : index
    %c0_9 = arith.constant 0 : index
    %8 = vector.load %arg5[%c0_8, %c0_9] : memref<1x8xf32, #tpu.memory_space<vmem>>, vector<1x8xf32>
    %9 = vector.broadcast %8 : vector<1x8xf32> to vector<8x8xf32>
    %10 = arith.addf %7, %9 : vector<8x8xf32>
    %c0_10 = arith.constant 0 : index
    %c0_11 = arith.constant 0 : index
    %11 = vector.load %arg6[%c0_10, %c0_11] : memref<8x8xf32, #tpu.memory_space<vmem>>, vector<8x8xf32>
    %cst_12 = arith.constant dense<0.000000e+00> : vector<8x8xf32>
    %12 = tpu.matmul %10, %11, %cst_12 {dimension_numbers = #tpu.dot_dimension_numbers<[1], [0], [0], [1], [0, 0, 1, 1], [], []>, precision = #tpu.contract_precision<fp32>} : vector<8x8xf32>, vector<8x8xf32>, vector<8x8xf32> -> vector<8x8xf32>
    %c0_13 = arith.constant 0 : index
    %c0_14 = arith.constant 0 : index
    %13 = vector.load %arg7[%c0_13, %c0_14] : memref<1x8xf32, #tpu.memory_space<vmem>>, vector<1x8xf32>
    %14 = vector.broadcast %13 : vector<1x8xf32> to vector<8x8xf32>
    %15 = arith.addf %12, %14 : vector<8x8xf32>
    %16 = arith.addf %15, %10 : vector<8x8xf32>
    %c0_15 = arith.constant 0 : index
    %c0_16 = arith.constant 0 : index
    %17 = vector.load %arg8[%c0_15, %c0_16] : memref<8x8xf32, #tpu.memory_space<vmem>>, vector<8x8xf32>
    tpu.vector_store %arg8[%c0_15, %c0_16], %16 {strides = array<i32>} : memref<8x8xf32, #tpu.memory_space<vmem>>, vector<8x8xf32>,
    return
  }
  func.func @transform_0(%arg0: i32) -> (i32, i32) {
    %c0_i32 = arith.constant 0 : i32
    %c0_i32_0 = arith.constant 0 : i32
    return %arg0, %c0_i32 : i32, i32
  }
  func.func @transform_1(%arg0: i32) -> (i32, i32) {
    %c0_i32 = arith.constant 0 : i32
    %c0_i32_0 = arith.constant 0 : i32
    %c0_i32_1 = arith.constant 0 : i32
    return %c0_i32, %c0_i32_0 : i32, i32
  }
  func.func @transform_2(%arg0: i32) -> (i32, i32) {
    %c0_i32 = arith.constant 0 : i32
    %c0_i32_0 = arith.constant 0 : i32
    %c0_i32_1 = arith.constant 0 : i32
    return %c0_i32, %c0_i32_0 : i32, i32
  }
  func.func @transform_3(%arg0: i32) -> (i32, i32) {
    %c0_i32 = arith.constant 0 : i32
    %c0_i32_0 = arith.constant 0 : i32
    %c0_i32_1 = arith.constant 0 : i32
    return %c0_i32, %c0_i32_0 : i32, i32
  }
  func.func @transform_4(%arg0: i32) -> (i32, i32) {
    %c0_i32 = arith.constant 0 : i32
    %c0_i32_0 = arith.constant 0 : i32
    %c0_i32_1 = arith.constant 0 : i32
    return %c0_i32, %c0_i32_0 : i32, i32
  }
  func.func @transform_5(%arg0: i32) -> (i32, i32) {
    %c0_i32 = arith.constant 0 : i32
    %c0_i32_0 = arith.constant 0 : i32
    %c0_i32_1 = arith.constant 0 : i32
    return %c0_i32, %c0_i32_0 : i32, i32
  }
  func.func @transform_6(%arg0: i32) -> (i32, i32) {
    %c0_i32 = arith.constant 0 : i32
    %c0_i32_0 = arith.constant 0 : i32
    %c0_i32_1 = arith.constant 0 : i32
    return %c0_i32, %c0_i32_0 : i32, i32
  }
  func.func @transform_7(%arg0: i32) -> (i32, i32) {
    %c0_i32 = arith.constant 0 : i32
    %c0_i32_0 = arith.constant 0 : i32
    return %arg0, %c0_i32 : i32, i32
  }
}

</mosaic_0001>

<bundles_post_ra>
// kernel: tile.10
= control target key start
LH: loop header
LB: loop body
LE: loop exit
PB: predicated region body
PF: predicated region fallthrough
CT: control target
= control target key end

     0   :  { %s46_s0 = inlined_call_operand.vmem [shape: f32[8], index: 0, kind: input, shape index: {}]   ;;  %s47_s1 = inlined_call_operand.vmem [shape: f32[39,1,1,8], index: 1, kind: output, shape index: {}]  }
   0x1   :  { %v4_v0 = vld [vmem:[%s46_s0] ss:$0 sm:$0xff] }
   0x2   :  { %5 = vst [vmem:[%s47_s1] sm:$0xff] %v4_v0  ;;  %14 = vst [vmem:[%s47_s1 + $0x8] sm:$0xff] %v4_v0 }
   0x3   :  { %15 = vst [vmem:[%s47_s1 + $0x10] sm:$0xff] %v4_v0  ;;  %16 = vst [vmem:[%s47_s1 + $0x18] sm:$0xff] %v4_v0 }
   0x4   :  { %17 = vst [vmem:[%s47_s1 + $0x20] sm:$0xff] %v4_v0 }

// kernel: tile.11
= control target key start
LH: loop header
LB: loop body
LE: loop exit
PB: predicated region body
PF: predicated region fallthrough
CT: control target
= control target key end

     0   :  { %s11_s6 = smov 3  ;;  %s25_s9 = smov 3  ;;  %vm6_vm0 = vcmask 1042434   ;;  %vm8_vm1 = vcmask 64512   ;;  %vm15_vm2 = vcmask 1048512   ;;  %vm22_vm3 = vcmask 982912   ;;  %s306_s0 = inlined_call_operand.vmem [shape: f32[39,1,1,8], index: 0, kind: input, shape index: {}]   ;;  %s307_s1 = inlined_call_operand.vmem [shape: f32[1,312], index: 1, kind: output, shape index: {}]  }
   0x1   :  { %v158_v0 = vld [vmem:[%s306_s0 + $0xf] ss:$16 sm:%s11_s6]   ;;  %s196_s10 = smov 120   ;;  %v160_v1 = vld [vmem:[%s306_s0 + $0xd] ss:$16 sm:%s25_s9]   ;;  %s18_s13 = smov 3 }
   0x2   :  { %13 = vrot.lane.b32.xlu0 %v158_v0, %s196_s10  ;;  %s197_s14 = smov 104   ;;  %v159_v2 = vld [vmem:[%s306_s0 + $0xe] ss:$16 sm:%s18_s13]   ;;  %s32_s17 = smov 3  ;;  %v168_v9 = vld [vmem:[%s306_s0 + $0x24] sm:$0x4]  }
   0x3   :  { %27 = vrot.lane.b32.xlu1 %v160_v1, %s197_s14  ;;  %v161_v3 = vld [vmem:[%s306_s0 + $0xc] ss:$16 sm:%s32_s17]   ;;  %s39_s20 = smov 3  ;;  %s46_s21 = smov 3  ;;  %v170_v10 = vld [vmem:[%s306_s0 + $0x23] sm:$0x4]  }
   0x4   :  { %s198_s22 = smov 112   ;;  %s199_s23 = smov 96   ;;  %v162_v4 = vld [vmem:[%s306_s0 + $0xb] ss:$16 sm:%s39_s20]   ;;  %v163_v5 = vld [vmem:[%s306_s0 + $0xa] ss:$16 sm:%s46_s21]  }
   0x5   :  { %s53_s28 = smov 3  ;;  %s60_s29 = smov 3  ;;  %v157_v11 = vld [vmem:[%s306_s0 + $0x1e] sm:$0x4]   ;;  %v172_v17 = vld [vmem:[%s306_s0 + $0x22] sm:$0x4]  }
   0x6   :  { %20 = vrot.lane.b32.xlu0 %v159_v2, %s198_s22  ;;  %s200_s30 = smov 88   ;;  %s74_s2 = smov 3  ;;  %v164_v6 = vld [vmem:[%s306_s0 + $0x9] ss:$16 sm:%s53_s28]   ;;  %v174_v22 = vld [vmem:[%s306_s0 + $0x21] sm:$0x4]  }
   0x7   :  { %34 = vrot.lane.b32.xlu1 %v161_v3, %s199_s23  ;;  %s201_s3 = smov 80   ;;  %v165_v7 = vld [vmem:[%s306_s0 + $0x8] ss:$16 sm:%s60_s29]   ;;  %s67_s8 = smov 3  ;;  %v176_v24 = vld [vmem:[%s306_s0 + $0x20] sm:$0x4]  }
   0x8   :  { %v167_v8 = vld [vmem:[%s306_s0 + $0x6] ss:$16 sm:%s74_s2]   ;;  %s85_s13 = smov 3  ;;  %s202_s14 = smov 72   ;;  %v166_v12 = vld [vmem:[%s306_s0 + $0x7] ss:$16 sm:%s67_s8]  }
   0x9   :  { %s96_s17 = smov 3  ;;  %s203_s20 = smov 64   ;;  %v79_v13 = vsel %vm6_vm0, %v168_v9, %v167_v8  ;;  %v169_v14 = vld [vmem:[%s306_s0 + $0x5] ss:$16 sm:%s85_s13]   ;;  %v178_v28 = vld [vmem:[%s306_s0 + $0x1f] sm:$0x4]  }
   0xa   :  { %41 = vrot.lane.b32.xlu0 %v162_v4, %s200_s30  ;;  %s2_s23 = smov 3  ;;  %v171_v16 = vld [vmem:[%s306_s0 + $0x4] ss:$16 sm:%s96_s17]   ;;  %s204_s4 = smov 56   ;;  %v90_v19 = vsel %vm6_vm0, %v170_v10, %v169_v14  ;;  %vm29_vm4 = vcmask 917312   ;;  %vm36_vm5 = vcmask 851712  }
   0xb   :  { %48 = vrot.lane.b32.xlu1 %v163_v5, %s201_s3  ;;  %v3_v15 = vld [vmem:[%s306_s0] ss:$16 sm:%s2_s23]   ;;  %s107_s3 = smov 3  ;;  %s118_s5 = smov 3  ;;  %v101_v20 = vsel %vm6_vm0, %v172_v17, %v171_v16  ;;  %vm43_vm6 = vcmask 786112   ;;  %vm50_vm7 = vcmask 720512  }
   0xc   :  { %v7_v18 = vsel %vm6_vm0, %v157_v11, %v3_v15  ;;  %s205_s6 = smov 48   ;;  %v173_v21 = vld [vmem:[%s306_s0 + $0x3] ss:$16 sm:%s107_s3]   ;;  %v175_v23 = vld [vmem:[%s306_s0 + $0x2] ss:$16 sm:%s118_s5]   ;;  %s129_s15 = smov 3 }
   0xd   :  { %9 = vst.msk [vmem:[#allocation0] ss:$8 sm:$0x7] %vm8_vm1, %v7_v18   ;;  %s206_s16 = smov 40   ;;  %s207_s17 = smov 32   ;;  %v112_v25 = vsel %vm6_vm0, %v174_v22, %v173_v21  ;;  %v123_v26 = vsel %vm6_vm0, %v176_v24, %v175_v23  ;;  %vm57_vm8 = vcmask 654912  }
   0xe   :  { %55 = vrot.lane.b32.xlu0 %v164_v6, %s202_s14  ;;  %v177_v27 = vld [vmem:[%s306_s0 + $0x1] ss:$16 sm:%s129_s15]   ;;  %s208_s0 = smov 24   ;;  %s209_s22 = smov 16   ;;  %vm64_vm9 = vcmask 589312   ;;  %vm71_vm10 = vcmask 523712  }
   0xf   :  { %62 = vrot.lane.b32.xlu1 %v165_v7, %s203_s20  ;;  %v134_v29 = vsel %vm6_vm0, %v178_v28, %v177_v27  ;;  %s210_s23 = smov 8   ;;  %vm82_vm11 = vcmask 458112   ;;  %vm93_vm12 = vcmask 392512   ;;  %vm104_vm13 = vcmask 326912  }
  0x10   :  { %vm115_vm14 = vcmask 261312   ;;  %vm126_vm15 = vcmask 195712   ;;  %vm137_vm0 = vcmask 130112  }
  0x12   :  { %69 = vrot.lane.b32.xlu0 %v166_v12, %s204_s4 }
  0x13   :  { %80 = vrot.lane.b32.xlu1 %v79_v13, %s205_s6 }
  0x16   :  { %91 = vrot.lane.b32.xlu0 %v90_v19, %s206_s16 }
  0x17   :  { %102 = vrot.lane.b32.xlu1 %v101_v20, %s207_s17 }
  0x1a   :  { %113 = vrot.lane.b32.xlu0 %v112_v25, %s208_s0 }
  0x1b   :  { %124 = vrot.lane.b32.xlu1 %v123_v26, %s209_s22 }
  0x1e   :  { %135 = vrot.lane.b32.xlu0 %v134_v29, %s210_s23 }
  0x74   :  { %v14_v30 = vpop.permute.xlu0 %13  }
  0x75   :  { %16 = vst.msk [vmem:[#allocation0] ss:$8 sm:$0x3] %vm15_vm2, %v14_v30   ;;  %v28_v31 = vpop.permute.xlu1 %27  }
  0x78   :  { %v21_v32 = vpop.permute.xlu0 %20  }
  0x79   :  { %23 = vst.msk [vmem:[#allocation0] ss:$8 sm:$0x3] %vm22_vm3, %v21_v32   ;;  %v35_v33 = vpop.permute.xlu1 %34  }
  0x7a   :  { %30 = vst.msk [vmem:[#allocation0] ss:$8 sm:$0x3] %vm29_vm4, %v28_v31  }
  0x7b   :  { %37 = vst.msk [vmem:[#allocation0] ss:$8 sm:$0x3] %vm36_vm5, %v35_v33  }
  0x7c   :  { %v42_v34 = vpop.permute.xlu0 %41  }
  0x7d   :  { %44 = vst.msk [vmem:[#allocation0] ss:$8 sm:$0x3] %vm43_vm6, %v42_v34   ;;  %v49_v35 = vpop.permute.xlu1 %48  }
  0x7e   :  { %51 = vst.msk [vmem:[#allocation0] ss:$8 sm:$0x3] %vm50_vm7, %v49_v35  }
  0x80   :  { %v56_v36 = vpop.permute.xlu0 %55  }
  0x81   :  { %58 = vst.msk [vmem:[#allocation0] ss:$8 sm:$0x3] %vm57_vm8, %v56_v36   ;;  %v63_v37 = vpop.permute.xlu1 %62  }
  0x82   :  { %65 = vst.msk [vmem:[#allocation0] ss:$8 sm:$0x3] %vm64_vm9, %v63_v37  }
  0x84   :  { %v70_v38 = vpop.permute.xlu0 %69  }
  0x85   :  { %72 = vst.msk [vmem:[#allocation0] ss:$8 sm:$0x3] %vm71_vm10, %v70_v38   ;;  %v81_v39 = vpop.permute.xlu1 %80  }
  0x86   :  { %83 = vst.msk [vmem:[#allocation0] ss:$8 sm:$0x7] %vm82_vm11, %v81_v39  }
  0x88   :  { %v92_v40 = vpop.permute.xlu0 %91  }
  0x89   :  { %94 = vst.msk [vmem:[#allocation0] ss:$8 sm:$0x7] %vm93_vm12, %v92_v40   ;;  %v103_v41 = vpop.permute.xlu1 %102  }
  0x8a   :  { %105 = vst.msk [vmem:[#allocation0] ss:$8 sm:$0x7] %vm104_vm13, %v103_v41  }
  0x8c   :  { %v114_v42 = vpop.permute.xlu0 %113  }
  0x8d   :  { %116 = vst.msk [vmem:[#allocation0] ss:$8 sm:$0x7] %vm115_vm14, %v114_v42   ;;  %v125_v43 = vpop.permute.xlu1 %124  }
  0x8e   :  { %127 = vst.msk [vmem:[#allocation0] ss:$8 sm:$0x7] %vm126_vm15, %v125_v43  }
  0x90   :  { %v136_v44 = vpop.permute.xlu0 %135  }
  0x91   :  { %138 = vst.msk [vmem:[#allocation0] ss:$8 sm:$0x7] %vm137_vm0, %v136_v44  }
  0x98   :  { %v142_v45 = vld [vmem:[#allocation0] sm:$0x1]  ;;  %v146_v46 = vld [vmem:[#allocation0 + $0x8] sm:$0x1]  ;;  %v151_v47 = vld [vmem:[#allocation0 + $0x10] sm:$0x1] }
  0x99   :  { %144 = vst [vmem:[%s307_s1] sm:$0x1] %v142_v45  ;;  %179 = vst [vmem:[%s307_s1 + $0x1] sm:$0x1] %v146_v46 }
  0x9a   :  { %180 = vst [vmem:[%s307_s1 + $0x2] sm:$0x1] %v151_v47 }

// kernel: tile.14
= control target key start
LH: loop header
LB: loop body
LE: loop exit
PB: predicated region body
PF: predicated region fallthrough
CT: control target
= control target key end

     0   :  { %s28_s0 = inlined_call_operand.vmem [shape: f32[16], index: 0, kind: input, shape index: {}]   ;;  %s29_s1 = inlined_call_operand.vmem [shape: f32[16,1,1,16], index: 1, kind: output, shape index: {}]  }
   0x1   :  { %v4_v0 = vld [vmem:[%s28_s0] ss:$0 sm:$0xff] }
   0x2   :  { %5 = vst [vmem:[%s29_s1] sm:$0xff] %v4_v0  ;;  %8 = vst [vmem:[%s29_s1 + $0x8] sm:$0xff] %v4_v0 }

// kernel: tile.15
= control target key start
LH: loop header
LB: loop body
LE: loop exit
PB: predicated region body
PF: predicated region fallthrough
CT: control target
= control target key end

     0   :  { %s7_s6 = smov 3  ;;  %s21_s9 = smov 3  ;;  %vm4_vm0 = vcmask 130048   ;;  %vm11_vm1 = vcmask 1048448   ;;  %vm18_vm2 = vcmask 917248   ;;  %vm25_vm3 = vcmask 786048   ;;  %s128_s0 = inlined_call_operand.vmem [shape: f32[16,1,1,16], index: 0, kind: input, shape index: {}]   ;;  %s129_s1 = inlined_call_operand.vmem [shape: f32[1,256], index: 1, kind: output, shape index: {}]  }
   0x1   :  { %v66_v0 = vld [vmem:[%s128_s0 + $0x7] ss:$8 sm:%s7_s6]   ;;  %s81_s10 = smov 112   ;;  %v68_v1 = vld [vmem:[%s128_s0 + $0x5] ss:$8 sm:%s21_s9]   ;;  %s14_s13 = smov 3 }
   0x2   :  { %9 = vrot.lane.b32.xlu0 %v66_v0, %s81_s10  ;;  %s82_s14 = smov 80   ;;  %v67_v2 = vld [vmem:[%s128_s0 + $0x6] ss:$8 sm:%s14_s13]   ;;  %s28_s17 = smov 3  ;;  %vm32_vm4 = vcmask 654848   ;;  %vm39_vm5 = vcmask 523648  }
   0x3   :  { %23 = vrot.lane.b32.xlu1 %v68_v1, %s82_s14  ;;  %v69_v3 = vld [vmem:[%s128_s0 + $0x4] ss:$8 sm:%s28_s17]   ;;  %s35_s20 = smov 3  ;;  %s42_s21 = smov 3  ;;  %vm46_vm6 = vcmask 392448   ;;  %vm53_vm7 = vcmask 261248  }
   0x4   :  { %s83_s22 = smov 96   ;;  %s84_s23 = smov 64   ;;  %v70_v4 = vld [vmem:[%s128_s0 + $0x3] ss:$8 sm:%s35_s20]   ;;  %v71_v5 = vld [vmem:[%s128_s0 + $0x2] ss:$8 sm:%s42_s21]  }
   0x5   :  { %s2_s26 = smov 3  ;;  %s49_s29 = smov 3 }
   0x6   :  { %16 = vrot.lane.b32.xlu0 %v67_v2, %s83_s22  ;;  %v3_v6 = vld [vmem:[%s128_s0] ss:$8 sm:%s2_s26]   ;;  %s85_s3 = smov 48   ;;  %s86_s4 = smov 32  }
   0x7   :  { %30 = vrot.lane.b32.xlu1 %v69_v3, %s84_s23  ;;  %5 = vst.msk [vmem:[#allocation0] ss:$8 sm:$0x3] %vm4_vm0, %v3_v6   ;;  %v72_v7 = vld [vmem:[%s128_s0 + $0x1] ss:$8 sm:%s49_s29]   ;;  %s87_s0 = smov 16  }
   0xa   :  { %37 = vrot.lane.b32.xlu0 %v70_v4, %s85_s3 }
   0xb   :  { %44 = vrot.lane.b32.xlu1 %v71_v5, %s86_s4 }
   0xe   :  { %51 = vrot.lane.b32.xlu0 %v72_v7, %s87_s0 }
  0x74   :  { %v10_v8 = vpop.permute.xlu0 %9  }
  0x75   :  { %12 = vst.msk [vmem:[#allocation0] ss:$8 sm:$0x3] %vm11_vm1, %v10_v8   ;;  %v24_v9 = vpop.permute.xlu1 %23  }
  0x78   :  { %v17_v10 = vpop.permute.xlu0 %16  }
  0x79   :  { %19 = vst.msk [vmem:[#allocation0] ss:$8 sm:$0x3] %vm18_vm2, %v17_v10   ;;  %v31_v11 = vpop.permute.xlu1 %30  }
  0x7a   :  { %26 = vst.msk [vmem:[#allocation0] ss:$8 sm:$0x3] %vm25_vm3, %v24_v9  }
  0x7b   :  { %33 = vst.msk [vmem:[#allocation0] ss:$8 sm:$0x3] %vm32_vm4, %v31_v11  }
  0x7c   :  { %v38_v12 = vpop.permute.xlu0 %37  }
  0x7d   :  { %40 = vst.msk [vmem:[#allocation0] ss:$8 sm:$0x3] %vm39_vm5, %v38_v12   ;;  %v45_v13 = vpop.permute.xlu1 %44  }
  0x7e   :  { %47 = vst.msk [vmem:[#allocation0] ss:$8 sm:$0x3] %vm46_vm6, %v45_v13  }
  0x80   :  { %v52_v14 = vpop.permute.xlu0 %51  }
  0x81   :  { %54 = vst.msk [vmem:[#allocation0] ss:$8 sm:$0x3] %vm53_vm7, %v52_v14  }
  0x88   :  { %v58_v15 = vld [vmem:[#allocation0] sm:$0x1]  ;;  %v62_v16 = vld [vmem:[#allocation0 + $0x8] sm:$0x1] }
  0x89   :  { %60 = vst [vmem:[%s129_s1] sm:$0x1] %v58_v15  ;;  %73 = vst [vmem:[%s129_s1 + $0x1] sm:$0x1] %v62_v16 }

// kernel: net_forward.2
= control target key start
LH: loop header
LB: loop body
LE: loop exit
PB: predicated region body
PF: predicated region fallthrough
CT: control target
= control target key end

     0   :  { %v1963_v1 = vmov 0   ;;  %vm112_vm0 = vcmask 1046528   ;;  %vm108_vm1 = vcmask 375808   ;;  %v1964_v18 = vmov 0.0   ;;  %s2557_s3 = inlined_call_operand.vmem [shape: bf16[46,384], index: 3, kind: input, shape index: {}]   ;;  %s2558_s2 = inlined_call_operand.vmem [shape: bf16[46,384], index: 2, kind: input, shape index: {}]   ;;  %s2559_s1 = inlined_call_operand.vmem [shape: f32[8,46], index: 1, kind: input, shape index: {}]   ;;  %s2560_s6 = inlined_call_operand.vmem [shape: bf16[384,256], index: 6, kind: input, shape index: {}]   ;;  %s2561_s5 = inlined_call_operand.vmem [shape: bf16[384,256], index: 5, kind: input, shape index: {}]   ;;  %s2562_s4 = inlined_call_operand.vmem [shape: f32[1,384], index: 4, kind: input, shape index: {}]   ;;  %s2563_s8 = inlined_call_operand.vmem [shape: bf16[256,128], index: 8, kind: input, shape index: {}]   ;;  %s2564_s7 = inlined_call_operand.vmem [shape: f32[1,256], index: 7, kind: input, shape index: {}]   ;;  %s2565_s0 = inlined_call_operand.<no memory space> [shape: s32[1], index: 0, kind: input, shape index: {}]   ;;  %s2566_s9 = inlined_call_operand.vmem [shape: f32[8,128], index: 9, kind: output, shape index: {0}]   ;;  %s2567_s10 = inlined_call_operand.vmem [shape: f32[8,128], index: 10, kind: output, shape index: {1}]  }
   0x1   :  { %v1779_v0 = vld [vmem:[%s2557_s3 + $0x4] ss:$12 sps:$4 sm:$0xff]   ;;  %154 = vmatprep.mubr.bf16.mxu1 %v1963_v1  ;;  %289 = vmatprep.mubr.bf16.mxu0 %v1963_v1  ;;  %v1783_v3 = vld [vmem:[%s2557_s3] ss:$12 sps:$4 sm:$0xff]   ;;  %v1785_v5 = vld [vmem:[%s2557_s3 + $0x1c] ss:$12 sps:$4 sm:$0xff]  }
   0x2   :  { %v1781_v2 = vld [vmem:[%s2558_s2 + $0x4] ss:$12 sps:$4 sm:$0xff]   ;;  %122 = vmatprep.subr.bf16.mxu1 %v1779_v0  ;;  %v1784_v4 = vld [vmem:[%s2558_s2] ss:$12 sps:$4 sm:$0xff]   ;;  %v1787_v6 = vld [vmem:[%s2558_s2 + $0x1c] ss:$12 sps:$4 sm:$0xff]  }
   0x3   :  { %257 = vmatprep.subr.bf16.mxu0 %v1781_v2  ;;  %123 = vmatpush1.bf16.msra.mxu1 %v1783_v3  ;;  %v1789_v7 = vld [vmem:[%s2557_s3 + $0x18] ss:$12 sps:$4 sm:$0xff]   ;;  %v1791_v9 = vld [vmem:[%s2557_s3 + $0x34] ss:$12 sps:$4 sm:$0x7f]   ;;  %vm1965_vm2 = vmmov 0  }
   0x4   :  { %258 = vmatpush1.bf16.msra.mxu0 %v1784_v4  ;;  %124 = vmatprep.subr.bf16.mxu1 %v1785_v5  ;;  %v1790_v8 = vld [vmem:[%s2558_s2 + $0x18] ss:$12 sps:$4 sm:$0xff]   ;;  %v1793_v10 = vld [vmem:[%s2558_s2 + $0x34] ss:$12 sps:$4 sm:$0x7f]   ;;  %vm1538_vm4 = vcmask 1040384  }
   0x5   :  { %259 = vmatprep.subr.bf16.mxu0 %v1787_v6  ;;  %v1795_v11 = vld [vmem:[%s2557_s3 + $0x30] ss:$12 sps:$4 sm:$0x7f]   ;;  %v34_v13 = vld [vmem:[%s2559_s1] sm:$0xff]  ;;  %v1797_v17 = vld [vmem:[%s2557_s3 + $0x8] ss:$12 sps:$4 sm:$0xff]  }
   0x6   :  { %v1796_v12 = vld [vmem:[%s2558_s2 + $0x30] ss:$12 sps:$4 sm:$0x7f]   ;;  %v114_v14 = vsel %vm112_vm0, %v1795_v11, 0  ;;  %v35_v16 = vpack.c.bf16 %v34_v13, %v34_v13  ;;  %v1798_v20 = vld [vmem:[%s2557_s3 + $0x20] ss:$12 sps:$4 sm:$0xff]  }
   0x7   :  { %125 = vmatpush1.bf16.msra.mxu1 %v1789_v7  ;;  %v249_v15 = vsel %vm112_vm0, %v1796_v12, 0  ;;  %v1799_v21 = vld [vmem:[%s2557_s3 + $0x38] ss:$12 sps:$4 sm:$0x7f]   ;;  %v1800_v26 = vld [vmem:[%s2558_s2 + $0x8] ss:$12 sps:$4 sm:$0xff]  }
   0x8   :  { %260 = vmatpush1.bf16.msra.mxu0 %v1790_v8  ;;  %1560 = vmatprep.subr.msk.bf16.mxu1 %vm112_vm0, %v1791_v9  ;;  %v36_v19 = vunpack.c.l.bf16 %v35_v16  ;;  %v120_v23 = vsel %vm112_vm0, %v1799_v21, 0  ;;  %v1805_v24 = vld [vmem:[%s2560_s6 + $0x4] ss:$8 sps:$4 sm:$0xff]   ;;  %v1803_v27 = vld [vmem:[%s2560_s6] ss:$8 sps:$4 sm:$0xff]   ;;  %vm1540_vm5 = vcmask 1041408  }
   0x9   :  { %1572 = vmatprep.subr.msk.bf16.mxu0 %vm112_vm0, %v1793_v10  ;;  %v1808_v28 = vld [vmem:[%s2560_s6 + $0x14] ss:$8 sps:$4 sm:$0xff]   ;;  %v1801_v29 = vld [vmem:[%s2558_s2 + $0x20] ss:$12 sps:$4 sm:$0xff]   ;;  %v1806_v31 = vld [vmem:[%s2560_s6 + $0x10] ss:$8 sps:$4 sm:$0xff]  }
   0xa   :  { %v37_v22 = vsub.f32 %v34_v13, %v36_v19  ;;  %v1802_v30 = vld [vmem:[%s2558_s2 + $0x38] ss:$12 sps:$4 sm:$0x7f]   ;;  %v1809_v33 = vld [vmem:[%s2560_s6 + $0x20] ss:$8 sps:$4 sm:$0xff]  }
   0xb   :  { %127 = vmatpush1.bf16.msra.mxu1 %v114_v14  ;;  %v1811_v32 = vld [vmem:[%s2560_s6 + $0x24] ss:$8 sps:$4 sm:$0xff]   ;;  %v1814_v34 = vld [vmem:[%s2560_s6 + $0x34] ss:$8 sps:$4 sm:$0xff]   ;;  %v255_v35 = vsel %vm112_vm0, %v1802_v30, 0 }
   0xc   :  { %262 = vmatpush1.bf16.msra.mxu0 %v249_v15  ;;  %1746 = vmatprep.subr.bf16.mxu1 %v1964_v18  ;;  %v38_v25 = vpack.c.bf16 %v37_v22, %v37_v22  ;;  %v1812_v36 = vld [vmem:[%s2560_s6 + $0x30] ss:$8 sps:$4 sm:$0xff]   ;;  %v1817_v37 = vld [vmem:[%s2560_s6 + $0x44] ss:$8 sps:$4 sm:$0xff]   ;;  %v1815_v38 = vld [vmem:[%s2560_s6 + $0x40] ss:$8 sps:$4 sm:$0xff]  }
   0xd   :  { %341 = vmatprep.subr.bf16.mxu0 %v1781_v2  ;;  %v1820_v39 = vld [vmem:[%s2560_s6 + $0x54] ss:$8 sps:$4 sm:$0xff]   ;;  %v1818_v40 = vld [vmem:[%s2560_s6 + $0x50] ss:$8 sps:$4 sm:$0xff]   ;;  %v1823_v41 = vld [vmem:[%s2560_s6 + $0x64] ss:$8 sps:$4 sm:$0xff]  }
   0xe   :  { %1561 = vmatmul.mubr.msk.bf16.vlgmr.msra.gmra.mrb[0].mxu1 %vm108_vm1, %v35_v16  ;;  %v1821_v42 = vld [vmem:[%s2560_s6 + $0x60] ss:$8 sps:$4 sm:$0xff]   ;;  %v1826_v43 = vld [vmem:[%s2560_s6 + $0x74] ss:$8 sps:$4 sm:$0xff]   ;;  %v1824_v44 = vld [vmem:[%s2560_s6 + $0x70] ss:$8 sps:$4 sm:$0xff]  }
   0xf   :  { %1573 = vmatmul.mubr.msk.bf16.vlgmr.msra.gmra.mrb[0].mxu0 %vm108_vm1, %v35_v16  ;;  %1747 = vmatpush3.bf16.msra.mxu1 %v1797_v17  ;;  %v1829_v45 = vld [vmem:[%s2560_s6 + $0x84] ss:$8 sps:$4 sm:$0xff]   ;;  %v1827_v46 = vld [vmem:[%s2560_s6 + $0x80] ss:$8 sps:$4 sm:$0xff]   ;;  %v1832_v47 = vld [vmem:[%s2560_s6 + $0x94] ss:$8 sps:$4 sm:$0xff]  }
  0x10   :  { %342 = vmatpush1.bf16.msra.mxu0 %v1784_v4  ;;  %1748 = vmatprep.subr.bf16.mxu1 %v1964_v18  ;;  %v1830_v48 = vld [vmem:[%s2560_s6 + $0x90] ss:$8 sps:$4 sm:$0xff]   ;;  %v1835_v49 = vld [vmem:[%s2560_s6 + $0xa4] ss:$8 sps:$4 sm:$0xff]   ;;  %v1833_v50 = vld [vmem:[%s2560_s6 + $0xa0] ss:$8 sps:$4 sm:$0xff]  }
  0x11   :  { %343 = vmatprep.subr.bf16.mxu0 %v1787_v6  ;;  %1752 = vmatprep.mubr.msk.bf16.mxu1 %vm1965_vm2, %v1964_v18  ;;  %v1838_v51 = vld [vmem:[%s2560_s6 + $0xb4] ss:$8 sps:$4 sm:$0xff]   ;;  %v1836_v52 = vld [vmem:[%s2560_s6 + $0xb0] ss:$8 sps:$4 sm:$0xff]   ;;  %v1839_v53 = vld [vmem:[%s2560_s6 + $0xc0] ss:$8 sps:$4 sm:$0xff]  }
  0x12   :  { %373 = vmatprep.mubr.bf16.mxu0 %v1963_v1  ;;  %v1841_v54 = vld [vmem:[%s2560_s6 + $0xc4] ss:$8 sps:$4 sm:$0xff]   ;;  %v1844_v55 = vld [vmem:[%s2560_s6 + $0xd4] ss:$8 sps:$4 sm:$0xff]   ;;  %v1842_v56 = vld [vmem:[%s2560_s6 + $0xd0] ss:$8 sps:$4 sm:$0xff]  }
  0x13   :  { %1749 = vmatpush3.bf16.msra.mxu1 %v1798_v20  ;;  %v1847_v57 = vld [vmem:[%s2560_s6 + $0x104] ss:$8 sps:$4 sm:$0xff]   ;;  %v1845_v58 = vld [vmem:[%s2560_s6 + $0x100] ss:$8 sps:$4 sm:$0xff]   ;;  %v1853_v61 = vld [vmem:[%s2560_s6 + $0x114] ss:$8 sps:$4 sm:$0xff]  }
  0x14   :  { %344 = vmatpush1.bf16.msra.mxu0 %v1790_v8  ;;  %1750 = vmatprep.subr.bf16.mxu1 %v1964_v18  ;;  %v1850_v59 = vld [vmem:[%s2560_s6 + $0xe4] ss:$8 sps:$4 sm:$0xff]   ;;  %v1848_v60 = vld [vmem:[%s2560_s6 + $0xe0] ss:$8 sps:$4 sm:$0xff]   ;;  %v1851_v62 = vld [vmem:[%s2560_s6 + $0x110] ss:$8 sps:$4 sm:$0xff]  }
  0x15   :  { %1575 = vmatprep.subr.msk.bf16.mxu0 %vm112_vm0, %v1793_v10  ;;  %v1856_v63 = vld [vmem:[%s2560_s6 + $0xf4] ss:$8 sps:$4 sm:$0xff]   ;;  %v1854_v0 = vld [vmem:[%s2560_s6 + $0xf0] ss:$8 sps:$4 sm:$0xff]   ;;  %v1859_v2 = vld [vmem:[%s2560_s6 + $0x124] ss:$8 sps:$4 sm:$0xff]  }
  0x16   :  { %v1857_v3 = vld [vmem:[%s2560_s6 + $0x120] ss:$8 sps:$4 sm:$0xff]   ;;  %v2215_v4 = vld [vmem:[%s2561_s5 + $0x104] ss:$8 sps:$4 sm:$0xff]   ;;  %v1865_v5 = vld [vmem:[%s2560_s6 + $0x134] ss:$8 sps:$4 sm:$0xff]  }
  0x17   :  { %1751 = vmatpush3.bf16.msra.mxu1 %v120_v23  ;;  %v1863_v6 = vld [vmem:[%s2560_s6 + $0x130] ss:$8 sps:$4 sm:$0xff]   ;;  %v1871_v7 = vld [vmem:[%s2560_s6 + $0x144] ss:$8 sps:$4 sm:$0xff]   ;;  %v1869_v8 = vld [vmem:[%s2560_s6 + $0x140] ss:$8 sps:$4 sm:$0xff]  }
  0x18   :  { %346 = vmatpush1.bf16.msra.mxu0 %v249_v15  ;;  %1756 = vmatprep.subr.bf16.mxu1 %v1964_v18  ;;  %v1877_v9 = vld [vmem:[%s2560_s6 + $0x154] ss:$8 sps:$4 sm:$0xff]   ;;  %v1875_v10 = vld [vmem:[%s2560_s6 + $0x150] ss:$8 sps:$4 sm:$0xff]   ;;  %v1883_v11 = vld [vmem:[%s2560_s6 + $0x164] ss:$8 sps:$4 sm:$0xff]  }
  0x19   :  { %796 = vmatprep.subr.bf16.mxu0 %v1805_v24  ;;  %v1881_v12 = vld [vmem:[%s2560_s6 + $0x160] ss:$8 sps:$4 sm:$0xff]   ;;  %v1889_v13 = vld [vmem:[%s2560_s6 + $0x174] ss:$8 sps:$4 sm:$0xff]   ;;  %v1887_v14 = vld [vmem:[%s2560_s6 + $0x170] ss:$8 sps:$4 sm:$0xff]  }
  0x1a   :  { %1753 = vmatmul.mubr.msk.bf16.vlgmr.msra.gmra.mrb[4].mxu1 %vm108_vm1, %v35_v16  ;;  %v2251_v15 = vld [vmem:[%s2561_s5 + $0x4] ss:$8 sps:$4 sm:$0xff]  }
  0x1b   :  { %1576 = vmatmul.mubr.msk.bf16.vlgmr.msra.gmra.mrb[4].mxu0 %vm108_vm1, %v38_v25  ;;  %1757 = vmatpush3.bf16.msra.mxu1 %v1800_v26 }
  0x1c   :  { %1762 = vmatprep.mubr.msk.bf16.mxu1 %vm1965_vm2, %v1964_v18  ;;  %1758 = vmatprep.subr.bf16.mxu1 %v1964_v18 }
  0x1d   :  { %797 = vmatpush1.bf16.msra.mxu0 %v1803_v27 }
  0x1e   :  { %798 = vmatprep.subr.bf16.mxu0 %v1808_v28 }
  0x1f   :  { %1759 = vmatpush3.bf16.msra.mxu1 %v1801_v29 }
  0x20   :  { %1760 = vmatprep.subr.bf16.mxu1 %v1964_v18 }
  0x21   :  { %799 = vmatpush1.bf16.msra.mxu0 %v1806_v31 }
  0x22   :  { %800 = vmatprep.subr.bf16.mxu0 %v1811_v32 }
  0x23   :  { %1761 = vmatpush3.bf16.msra.mxu1 %v255_v35 }
  0x24   :  { %1766 = vmatprep.subr.bf16.mxu1 %v1964_v18 }
  0x25   :  { %801 = vmatpush1.bf16.msra.mxu0 %v1809_v33 }
  0x26   :  { %802 = vmatprep.subr.bf16.mxu0 %v1814_v34  ;;  %1763 = vmatmul.mubr.msk.bf16.vlgmr.msra.gmra.mrb[8].mxu1 %vm108_vm1, %v35_v16  ;;  %v427_v16 = vlaneseq }
  0x27   :  { %1767 = vmatpush3.bf16.msra.mxu1 %v1800_v26  ;;  %1772 = vmatprep.mubr.msk.bf16.mxu1 %vm1965_vm2, %v1964_v18 }
  0x28   :  { %1768 = vmatprep.subr.bf16.mxu1 %v1964_v18  ;;  %v2254_v27 = vshrl.u32 %v427_v16, 7  ;;  %v1901_v16 = vld [vmem:[%s2561_s5 + $0x14] ss:$8 sps:$4 sm:$0xff]  }
  0x29   :  { %803 = vmatpush1.bf16.msra.mxu0 %v1812_v36 }
  0x2a   :  { %804 = vmatprep.subr.bf16.mxu0 %v1817_v37  ;;  %v429_v28 = vsub.s32 0, %v2254_v27  ;;  %v433_v30 = vsub.s32 1, %v2254_v27 }
  0x2b   :  { %1769 = vmatpush3.bf16.msra.mxu1 %v1801_v29  ;;  %v425_v29 = vld [vmem:[%s2562_s4] sm:$0x7] }
  0x2c   :  { %1770 = vmatprep.subr.bf16.mxu1 %v1964_v18  ;;  %v430_v31 = vrot.slane %v425_v29, %v429_v28  ;;  %v434_v34 = vrot.slane %v425_v29, %v433_v30 }
  0x2d   :  { %805 = vmatpush1.bf16.msra.mxu0 %v1815_v38 }
  0x2e   :  { %806 = vmatprep.subr.bf16.mxu0 %v1820_v39 }
  0x2f   :  { %1771 = vmatpush3.bf16.msra.mxu1 %v255_v35 }
  0x30   :  { %837 = vmatprep.subr.bf16.mxu1 %v1847_v57 }
  0x31   :  { %807 = vmatpush1.bf16.msra.mxu0 %v1818_v40 }
  0x32   :  { %808 = vmatprep.subr.bf16.mxu0 %v1823_v41  ;;  %1773 = vmatmul.mubr.msk.bf16.vlgmr.msra.gmra.mrb[12].mxu1 %vm108_vm1, %v38_v25 }
  0x33   :  { %869 = vmatprep.mubr.bf16.mxu1 %v1963_v1  ;;  %838 = vmatpush1.bf16.msra.mxu1 %v1845_v58  ;;  %v2306_v58 = vld [vmem:[%s2561_s5 + $0x120] ss:$8 sps:$4 sm:$0xff]  }
  0x34   :  { %839 = vmatprep.subr.bf16.mxu1 %v1853_v61  ;;  %v2319_v61 = vld [vmem:[%s2561_s5 + $0x130] ss:$8 sps:$4 sm:$0xff]  }
  0x35   :  { %809 = vmatpush1.bf16.msra.mxu0 %v1821_v42 }
  0x36   :  { %810 = vmatprep.subr.bf16.mxu0 %v1826_v43 }
  0x37   :  { %840 = vmatpush1.bf16.msra.mxu1 %v1851_v62  ;;  %v2325_v62 = vld [vmem:[%s2561_s5 + $0x144] ss:$8 sps:$4 sm:$0xff]  }
  0x38   :  { %841 = vmatprep.subr.bf16.mxu1 %v1859_v2  ;;  %v2331_v2 = vld [vmem:[%s2561_s5 + $0x140] ss:$8 sps:$4 sm:$0xff]  }
  0x39   :  { %811 = vmatpush1.bf16.msra.mxu0 %v1824_v44 }
  0x3a   :  { %812 = vmatprep.subr.bf16.mxu0 %v1829_v45 }
  0x3b   :  { %842 = vmatpush1.bf16.msra.mxu1 %v1857_v3 }
  0x3c   :  { %843 = vmatprep.subr.bf16.mxu1 %v1865_v5 }
  0x3d   :  { %813 = vmatpush1.bf16.msra.mxu0 %v1827_v46 }
  0x3e   :  { %814 = vmatprep.subr.bf16.mxu0 %v1832_v47 }
  0x3f   :  { %844 = vmatpush1.bf16.msra.mxu1 %v1863_v6  ;;  %v2337_v6 = vld [vmem:[%s2561_s5 + $0x154] ss:$8 sps:$4 sm:$0xff]  }
  0x40   :  { %845 = vmatprep.subr.bf16.mxu1 %v1871_v7 }
  0x41   :  { %815 = vmatpush1.bf16.msra.mxu0 %v1830_v48  ;;  %v2276_v48 = vld [vmem:[%s2561_s5 + $0x100] ss:$8 sps:$4 sm:$0xff]  }
  0x42   :  { %816 = vmatprep.subr.bf16.mxu0 %v1835_v49 }
  0x43   :  { %846 = vmatpush1.bf16.msra.mxu1 %v1869_v8 }
  0x44   :  { %847 = vmatprep.subr.bf16.mxu1 %v1877_v9 }
  0x45   :  { %817 = vmatpush1.bf16.msra.mxu0 %v1833_v50  ;;  %v2285_v50 = vld [vmem:[%s2561_s5 + $0x114] ss:$8 sps:$4 sm:$0xff]  }
  0x46   :  { %818 = vmatprep.subr.bf16.mxu0 %v1838_v51 }
  0x47   :  { %848 = vmatpush1.bf16.msra.mxu1 %v1875_v10  ;;  %v2343_v10 = vld [vmem:[%s2561_s5 + $0x150] ss:$8 sps:$4 sm:$0xff]  }
  0x48   :  { %849 = vmatprep.subr.bf16.mxu1 %v1883_v11 }
  0x49   :  { %819 = vmatpush1.bf16.msra.mxu0 %v1836_v52  ;;  %v2293_v52 = vld [vmem:[%s2561_s5 + $0x110] ss:$8 sps:$4 sm:$0xff]  }
  0x4a   :  { %820 = vmatprep.subr.bf16.mxu0 %v1841_v54 }
  0x4b   :  { %850 = vmatpush1.bf16.msra.mxu1 %v1881_v12  ;;  %v2349_v12 = vld [vmem:[%s2561_s5 + $0x164] ss:$8 sps:$4 sm:$0xff]  }
  0x4c   :  { %851 = vmatprep.subr.bf16.mxu1 %v1889_v13  ;;  %v1893_v13 = vld [vmem:[%s2561_s5] ss:$8 sps:$4 sm:$0xff]  }
  0x4d   :  { %821 = vmatpush1.bf16.msra.mxu0 %v1839_v53 }
  0x4e   :  { %822 = vmatprep.subr.bf16.mxu0 %v1844_v55  ;;  %v2300_v55 = vld [vmem:[%s2561_s5 + $0x124] ss:$8 sps:$4 sm:$0xff]  }
  0x4f   :  { %852 = vmatpush1.bf16.msra.mxu1 %v1887_v14 }
  0x50   :  { %1118 = vmatprep.subr.bf16.mxu1 %v2251_v15 }
  0x51   :  { %823 = vmatpush1.bf16.msra.mxu0 %v1842_v56 }
  0x52   :  { %824 = vmatprep.subr.bf16.mxu0 %v1850_v59  ;;  %v2312_v59 = vld [vmem:[%s2561_s5 + $0x134] ss:$8 sps:$4 sm:$0xff]  }
  0x55   :  { %825 = vmatpush1.bf16.msra.mxu0 %v1848_v60  ;;  %v437_v60 = vsub.s32 2, %v2254_v27 }
  0x56   :  { %826 = vmatprep.subr.bf16.mxu0 %v1856_v63 }
  0x57   :  { %v438_v63 = vrot.slane %v425_v29, %v437_v60  ;;  %v1910_v29 = vld [vmem:[%s2561_s5 + $0x34] ss:$8 sps:$4 sm:$0xff]   ;;  %v1943_v60 = vld [vmem:[%s2561_s5 + $0xe4] ss:$8 sps:$4 sm:$0xff]  }
  0x59   :  { %827 = vmatpush1.bf16.msra.mxu0 %v1854_v0 }
  0x5a   :  { %1159 = vmatprep.subr.bf16.mxu0 %v2215_v4 }
  0xe1   :  { %v156_v17 = vpop.f32.mrb[0].mxu1 }
  0xe2   :  { %v291_v18 = vpop.f32.mrb[0].mxu0  ;;  %v158_v20 = vpop.f32.mrb[1].mxu1 }
  0xe3   :  { %v292_v19 = vadd.f32 %v291_v18, %v156_v17  ;;  %v293_v21 = vpop.f32.mrb[1].mxu0  ;;  %v160_v23 = vpop.f32.mrb[2].mxu1  ;;  %v2361_v17 = vld [vmem:[%s2561_s5 + $0x160] ss:$8 sps:$4 sm:$0xff]  }
  0xe4   :  { %v294_v22 = vadd.f32 %v293_v21, %v158_v20  ;;  %v295_v24 = vpop.f32.mrb[2].mxu0  ;;  %v161_v25 = vpop.f32.mrb[3].mxu1  ;;  %v1899_v20 = vld [vmem:[%s2561_s5 + $0x10] ss:$8 sps:$4 sm:$0xff]   ;;  %v1907_v23 = vld [vmem:[%s2561_s5 + $0x24] ss:$8 sps:$4 sm:$0xff]  }
  0xe5   :  { %v296_v26 = vpop.f32.mrb[3].mxu0  ;;  %v2383_v24 = vld [vmem:[%s2561_s5 + $0x170] ss:$8 sps:$4 sm:$0xff]   ;;  %v1905_v25 = vld [vmem:[%s2561_s5 + $0x20] ss:$8 sps:$4 sm:$0xff]  }
  0xed   :  { %v197_v32 = vpop.f32.mrb[4].mxu1 }
  0xee   :  { %v375_v33 = vpop.f32.mrb[4].mxu0  ;;  %v1754_v36 = vpop.f32.mrb[5].mxu1 }
  0xef   :  { %v422_v35 = vadd.f32 %v375_v33, %v292_v19  ;;  %v377_v37 = vpop.f32.mrb[5].mxu0  ;;  %v200_v39 = vpop.f32.mrb[6].mxu1  ;;  %v2367_v19 = vld [vmem:[%s2561_s5 + $0x174] ss:$8 sps:$4 sm:$0xff]   ;;  %v1913_v33 = vld [vmem:[%s2561_s5 + $0x44] ss:$8 sps:$4 sm:$0xff]  }
  0xf0   :  { %v423_v38 = vadd.f32 %v377_v37, %v294_v22  ;;  %v379_v40 = vpop.f32.mrb[6].mxu0  ;;  %v1755_v42 = vpop.f32.mrb[7].mxu1  ;;  %v1919_v36 = vld [vmem:[%s2561_s5 + $0x64] ss:$8 sps:$4 sm:$0xff]   ;;  %v1917_v37 = vld [vmem:[%s2561_s5 + $0x60] ss:$8 sps:$4 sm:$0xff]  }
  0xf1   :  { %v442_v41 = vadd.f32 %v430_v31, %v422_v35  ;;  %v380_v43 = vpop.f32.mrb[7].mxu0  ;;  %v1914_v35 = vld [vmem:[%s2561_s5 + $0x50] ss:$8 sps:$4 sm:$0xff]   ;;  %v1925_v40 = vld [vmem:[%s2561_s5 + $0x84] ss:$8 sps:$4 sm:$0xff]  }
  0xf2   :  { %v443_v44 = vadd.f32 %v434_v34, %v423_v38  ;;  %v1916_v34 = vld [vmem:[%s2561_s5 + $0x54] ss:$8 sps:$4 sm:$0xff]   ;;  %v1920_v39 = vld [vmem:[%s2561_s5 + $0x70] ss:$8 sps:$4 sm:$0xff]  }
  0xf3   :  { %v2265_v45 = vmax.f32 %v442_v41, 0.0  ;;  %v1922_v38 = vld [vmem:[%s2561_s5 + $0x74] ss:$8 sps:$4 sm:$0xff]   ;;  %v1923_v41 = vld [vmem:[%s2561_s5 + $0x80] ss:$8 sps:$4 sm:$0xff]  }
  0xf4   :  { %v2267_v46 = vmax.f32 %v443_v44, 0.0  ;;  %v1928_v42 = vld [vmem:[%s2561_s5 + $0x94] ss:$8 sps:$4 sm:$0xff]   ;;  %v1926_v43 = vld [vmem:[%s2561_s5 + $0x90] ss:$8 sps:$4 sm:$0xff]  }
  0xf5   :  { %v2280_v49 = vpack.c.bf16 %v2265_v45, %v2265_v45  ;;  %v1931_v44 = vld [vmem:[%s2561_s5 + $0xa4] ss:$8 sps:$4 sm:$0xff]  }
  0xf6   :  { %v2271_v47 = vpack.c.bf16 %v2267_v46, %v2267_v46 }
  0xf8   :  { %828 = vmatprep.mubr.bf16.mxu0 %v2271_v47  ;;  %v452_v21 = vunpack.c.l.bf16 %v2271_v47 }
  0xf9   :  { %829 = vmatmul.mubr.bf16.vlgmr.msra.gmra.mrb[8].mxu0 %v2280_v49  ;;  %v332_v51 = vpop.f32.mrb[8].mxu1 }
  0xfa   :  { %1160 = vmatpush1.bf16.msra.mxu0 %v2276_v48  ;;  %1191 = vmatprep.mubr.bf16.mxu0 %v1963_v1  ;;  %v333_v53 = vadd.f32 %v332_v51, %v197_v32  ;;  %v1764_v54 = vpop.f32.mrb[9].mxu1  ;;  %v455_v26 = vsub.f32 %v2267_v46, %v452_v21  ;;  %v1908_v32 = vld [vmem:[%s2561_s5 + $0x30] ss:$8 sps:$4 sm:$0xff]   ;;  %v1929_v46 = vld [vmem:[%s2561_s5 + $0xa0] ss:$8 sps:$4 sm:$0xff]  }
  0xfb   :  { %1161 = vmatprep.subr.bf16.mxu0 %v2285_v50  ;;  %v335_v56 = vpop.f32.mrb[10].mxu1  ;;  %v1932_v51 = vld [vmem:[%s2561_s5 + $0xb0] ss:$8 sps:$4 sm:$0xff]   ;;  %v1935_v54 = vld [vmem:[%s2561_s5 + $0xc0] ss:$8 sps:$4 sm:$0xff]  }
  0xfc   :  { %v1765_v57 = vpop.f32.mrb[11].mxu1  ;;  %v458_v31 = vpack.c.bf16 %v455_v26, %v455_v26  ;;  %v1940_v56 = vld [vmem:[%s2561_s5 + $0xd4] ss:$8 sps:$4 sm:$0xff]  }
  0xfd   :  { %v1938_v57 = vld [vmem:[%s2561_s5 + $0xd0] ss:$8 sps:$4 sm:$0xff]  }
  0xfe   :  { %1162 = vmatpush1.bf16.msra.mxu0 %v2293_v52 }
  0xff   :  { %1163 = vmatprep.subr.bf16.mxu0 %v2300_v55 }
 0x102   :  { %1164 = vmatpush1.bf16.msra.mxu0 %v2306_v58 }
 0x103   :  { %1165 = vmatprep.subr.bf16.mxu0 %v2312_v59 }
 0x105   :  { %v416_v0 = vpop.f32.mrb[12].mxu1 }
 0x106   :  { %1166 = vmatpush1.bf16.msra.mxu0 %v2319_v61  ;;  %v424_v3 = vadd.f32 %v416_v0, %v333_v53  ;;  %v1774_v5 = vpop.f32.mrb[13].mxu1  ;;  %v1937_v53 = vld [vmem:[%s2561_s5 + $0xc4] ss:$8 sps:$4 sm:$0xff]   ;;  %v1946_v0 = vld [vmem:[%s2561_s5 + $0xf4] ss:$8 sps:$4 sm:$0xff]  }
 0x107   :  { %1167 = vmatprep.subr.bf16.mxu0 %v2325_v62  ;;  %v419_v7 = vpop.f32.mrb[14].mxu1  ;;  %v451_v5 = vunpack.c.l.bf16 %v2280_v49 }
 0x108   :  { %v444_v8 = vadd.f32 %v438_v63, %v424_v3  ;;  %v1775_v9 = vpop.f32.mrb[15].mxu1  ;;  %v1941_v63 = vld [vmem:[%s2561_s5 + $0xe0] ss:$8 sps:$4 sm:$0xff]   ;;  %v1944_v3 = vld [vmem:[%s2561_s5 + $0xf0] ss:$8 sps:$4 sm:$0xff]  }
 0x109   :  { %v454_v7 = vsub.f32 %v2265_v45, %v451_v5  ;;  %v1947_v45 = vld [vmem:[%s2563_s8 + $0x40] sm:$0xff]   ;;  %v1960_v9 = vld [vmem:[%s2563_s8 + $0x30] sm:$0xff]  }
 0x10a   :  { %1168 = vmatpush1.bf16.msra.mxu0 %v2331_v2  ;;  %v447_v11 = vmax.f32 %v444_v8, 0.0  ;;  %v1959_v8 = vld [vmem:[%s2563_s8 + $0x70] sm:$0xff]  }
 0x10b   :  { %1169 = vmatprep.subr.bf16.mxu0 %v2337_v6 }
 0x10c   :  { %v450_v14 = vpack.c.bf16 %v447_v11, %v447_v11 }
 0x10e   :  { %1170 = vmatpush1.bf16.msra.mxu0 %v2343_v10  ;;  %v453_v18 = vunpack.c.l.bf16 %v450_v14  ;;  %870 = vmatmul.mubr.bf16.vlgmr.msra.gmra.mrb[16].mxu1 %v450_v14 }
 0x10f   :  { %1171 = vmatprep.subr.bf16.mxu0 %v2349_v12  ;;  %1119 = vmatpush1.bf16.msra.mxu1 %v1893_v13 }
 0x110   :  { %1150 = vmatprep.mubr.bf16.mxu1 %v2271_v47  ;;  %v2374_v22 = vsub.f32 %v447_v11, %v453_v18  ;;  %1120 = vmatprep.subr.bf16.mxu1 %v1901_v16  ;;  %v1934_v47 = vld [vmem:[%s2561_s5 + $0xb4] ss:$8 sps:$4 sm:$0xff]  }
 0x111   :  { %v1962_v11 = vld [vmem:[%s2563_s8 + $0x38] sm:$0xff]  }
 0x112   :  { %1172 = vmatpush1.bf16.msra.mxu0 %v2361_v17 }
 0x113   :  { %1173 = vmatprep.subr.bf16.mxu0 %v2367_v19  ;;  %1121 = vmatpush1.bf16.msra.mxu1 %v1899_v20 }
 0x114   :  { %1122 = vmatprep.subr.bf16.mxu1 %v1907_v23 }
 0x116   :  { %1174 = vmatpush1.bf16.msra.mxu0 %v2383_v24 }
 0x117   :  { %1200 = vmatprep.subr.bf16.mxu0 %v2251_v15  ;;  %1123 = vmatpush1.bf16.msra.mxu1 %v1905_v25  ;;  %v1911_v15 = vld [vmem:[%s2561_s5 + $0x40] ss:$8 sps:$4 sm:$0xff]  }
 0x118   :  { %1124 = vmatprep.subr.bf16.mxu1 %v1910_v29 }
 0x119   :  { %1192 = vmatmul.mubr.bf16.vlgmr.msra.gmra.mrb[12].mxu0 %v450_v14 }
 0x11a   :  { %1201 = vmatpush1.bf16.msra.mxu0 %v1893_v13  ;;  %1232 = vmatprep.mubr.bf16.mxu0 %v458_v31 }
 0x11b   :  { %1202 = vmatprep.subr.bf16.mxu0 %v1901_v16  ;;  %1125 = vmatpush1.bf16.msra.mxu1 %v1908_v32 }
 0x11c   :  { %1126 = vmatprep.subr.bf16.mxu1 %v1913_v33 }
 0x11e   :  { %1203 = vmatpush1.bf16.msra.mxu0 %v1899_v20 }
 0x11f   :  { %1204 = vmatprep.subr.bf16.mxu0 %v1907_v23  ;;  %1127 = vmatpush1.bf16.msra.mxu1 %v1911_v15 }
 0x120   :  { %1128 = vmatprep.subr.bf16.mxu1 %v1916_v34 }
 0x122   :  { %1205 = vmatpush1.bf16.msra.mxu0 %v1905_v25 }
 0x123   :  { %1206 = vmatprep.subr.bf16.mxu0 %v1910_v29  ;;  %1129 = vmatpush1.bf16.msra.mxu1 %v1914_v35 }
 0x124   :  { %1130 = vmatprep.subr.bf16.mxu1 %v1919_v36 }
 0x126   :  { %1207 = vmatpush1.bf16.msra.mxu0 %v1908_v32 }
 0x127   :  { %1208 = vmatprep.subr.bf16.mxu0 %v1913_v33  ;;  %1131 = vmatpush1.bf16.msra.mxu1 %v1917_v37 }
 0x128   :  { %1132 = vmatprep.subr.bf16.mxu1 %v1922_v38 }
 0x12a   :  { %1209 = vmatpush1.bf16.msra.mxu0 %v1911_v15 }
 0x12b   :  { %1210 = vmatprep.subr.bf16.mxu0 %v1916_v34  ;;  %1133 = vmatpush1.bf16.msra.mxu1 %v1920_v39 }
 0x12c   :  { %1134 = vmatprep.subr.bf16.mxu1 %v1925_v40 }
 0x12e   :  { %1211 = vmatpush1.bf16.msra.mxu0 %v1914_v35 }
 0x12f   :  { %1212 = vmatprep.subr.bf16.mxu0 %v1919_v36  ;;  %1135 = vmatpush1.bf16.msra.mxu1 %v1923_v41 }
 0x130   :  { %1136 = vmatprep.subr.bf16.mxu1 %v1928_v42 }
 0x132   :  { %1213 = vmatpush1.bf16.msra.mxu0 %v1917_v37 }
 0x133   :  { %1214 = vmatprep.subr.bf16.mxu0 %v1922_v38  ;;  %1137 = vmatpush1.bf16.msra.mxu1 %v1926_v43 }
 0x134   :  { %1138 = vmatprep.subr.bf16.mxu1 %v1931_v44 }
 0x136   :  { %1215 = vmatpush1.bf16.msra.mxu0 %v1920_v39 }
 0x137   :  { %1216 = vmatprep.subr.bf16.mxu0 %v1925_v40  ;;  %1139 = vmatpush1.bf16.msra.mxu1 %v1929_v46 }
 0x138   :  { %1140 = vmatprep.subr.bf16.mxu1 %v1934_v47 }
 0x13a   :  { %1217 = vmatpush1.bf16.msra.mxu0 %v1923_v41  ;;  %v1284_v41 = vld [vmem:[%s2564_s7] sm:$0x3] }
 0x13b   :  { %1218 = vmatprep.subr.bf16.mxu0 %v1928_v42  ;;  %1141 = vmatpush1.bf16.msra.mxu1 %v1932_v51 }
 0x13c   :  { %1142 = vmatprep.subr.bf16.mxu1 %v1937_v53 }
 0x13e   :  { %1219 = vmatpush1.bf16.msra.mxu0 %v1926_v43 }
 0x13f   :  { %1220 = vmatprep.subr.bf16.mxu0 %v1931_v44  ;;  %1143 = vmatpush1.bf16.msra.mxu1 %v1935_v54  ;;  %v1289_v44 = vrot.slane %v1284_v41, %v429_v28 }
 0x140   :  { %1144 = vmatprep.subr.bf16.mxu1 %v1940_v56 }
 0x142   :  { %1221 = vmatpush1.bf16.msra.mxu0 %v1929_v46 }
 0x143   :  { %1222 = vmatprep.subr.bf16.mxu0 %v1934_v47  ;;  %1145 = vmatpush1.bf16.msra.mxu1 %v1938_v57 }
 0x144   :  { %1146 = vmatprep.subr.bf16.mxu1 %v1943_v60 }
 0x146   :  { %1223 = vmatpush1.bf16.msra.mxu0 %v1932_v51  ;;  %v1293_v51 = vrot.slane %v1284_v41, %v433_v30 }
 0x147   :  { %1224 = vmatprep.subr.bf16.mxu0 %v1937_v53  ;;  %1147 = vmatpush1.bf16.msra.mxu1 %v1941_v63 }
 0x148   :  { %1148 = vmatprep.subr.bf16.mxu1 %v1946_v0 }
 0x14a   :  { %1225 = vmatpush1.bf16.msra.mxu0 %v1935_v54 }
 0x14b   :  { %1226 = vmatprep.subr.bf16.mxu0 %v1940_v56  ;;  %1149 = vmatpush1.bf16.msra.mxu1 %v1944_v3 }
 0x14c   :  { %1241 = vmatprep.subr.bf16.mxu1 %v2215_v4  ;;  %v457_v4 = vpack.c.bf16 %v454_v7, %v454_v7 }
 0x14e   :  { %1227 = vmatpush1.bf16.msra.mxu0 %v1938_v57  ;;  %1151 = vmatmul.mubr.bf16.vlgmr.msra.gmra.mrb[20].mxu1 %v2280_v49  ;;  %v1949_v49 = vld [vmem:[%s2563_s8 + $0x48] sm:$0xff]  }
 0x14f   :  { %1228 = vmatprep.subr.bf16.mxu0 %v1943_v60  ;;  %1242 = vmatpush1.bf16.msra.mxu1 %v2276_v48  ;;  %v1948_v48 = vld [vmem:[%s2563_s8] sm:$0xff]  }
 0x150   :  { %1273 = vmatprep.mubr.bf16.mxu1 %v1963_v1  ;;  %1243 = vmatprep.subr.bf16.mxu1 %v2285_v50  ;;  %v459_v1 = vpack.c.bf16 %v2374_v22, %v2374_v22  ;;  %v1950_v50 = vld [vmem:[%s2563_s8 + $0x8] sm:$0xff]  }
 0x152   :  { %1229 = vmatpush1.bf16.msra.mxu0 %v1941_v63 }
 0x153   :  { %1230 = vmatprep.subr.bf16.mxu0 %v1946_v0  ;;  %1244 = vmatpush1.bf16.msra.mxu1 %v2293_v52  ;;  %v1951_v52 = vld [vmem:[%s2563_s8 + $0x50] sm:$0xff]  }
 0x154   :  { %1245 = vmatprep.subr.bf16.mxu1 %v2300_v55  ;;  %v1952_v55 = vld [vmem:[%s2563_s8 + $0x10] sm:$0xff]  }
 0x156   :  { %1231 = vmatpush1.bf16.msra.mxu0 %v1944_v3 }
 0x157   :  { %1246 = vmatpush1.bf16.msra.mxu1 %v2306_v58  ;;  %1724 = vmatprep.subr.bf16.mxu0 %v1947_v45  ;;  %v1953_v58 = vld [vmem:[%s2563_s8 + $0x58] sm:$0xff]  }
 0x158   :  { %1247 = vmatprep.subr.bf16.mxu1 %v2312_v59  ;;  %v1954_v59 = vld [vmem:[%s2563_s8 + $0x18] sm:$0xff]  }
 0x159   :  { %1233 = vmatmul.mubr.bf16.vlgmr.msra.gmra.mrb[16].mxu0 %v457_v4 }
 0x15a   :  { %1725 = vmatpush3.bf16.msra.mxu0 %v1948_v48 }
 0x15b   :  { %1248 = vmatpush1.bf16.msra.mxu1 %v2319_v61  ;;  %1726 = vmatprep.subr.bf16.mxu0 %v1949_v49  ;;  %v1955_v61 = vld [vmem:[%s2563_s8 + $0x60] sm:$0xff]  }
 0x15c   :  { %1249 = vmatprep.subr.bf16.mxu1 %v2325_v62  ;;  %v1956_v62 = vld [vmem:[%s2563_s8 + $0x20] sm:$0xff]  }
 0x15e   :  { %1727 = vmatpush3.bf16.msra.mxu0 %v1950_v50 }
 0x15f   :  { %1250 = vmatpush1.bf16.msra.mxu1 %v2331_v2  ;;  %1728 = vmatprep.subr.bf16.mxu0 %v1951_v52  ;;  %v1957_v2 = vld [vmem:[%s2563_s8 + $0x68] sm:$0xff]  }
 0x160   :  { %1251 = vmatprep.subr.bf16.mxu1 %v2337_v6  ;;  %v1958_v6 = vld [vmem:[%s2563_s8 + $0x28] sm:$0xff]  }
 0x162   :  { %1729 = vmatpush3.bf16.msra.mxu0 %v1952_v55 }
 0x163   :  { %1252 = vmatpush1.bf16.msra.mxu1 %v2343_v10  ;;  %1730 = vmatprep.subr.bf16.mxu0 %v1953_v58  ;;  %v1961_v10 = vld [vmem:[%s2563_s8 + $0x78] sm:$0xff]  }
 0x164   :  { %1253 = vmatprep.subr.bf16.mxu1 %v2349_v12 }
 0x166   :  { %1731 = vmatpush3.bf16.msra.mxu0 %v1954_v59 }
 0x167   :  { %1254 = vmatpush1.bf16.msra.mxu1 %v2361_v17  ;;  %1732 = vmatprep.subr.bf16.mxu0 %v1955_v61 }
 0x168   :  { %1255 = vmatprep.subr.bf16.mxu1 %v2367_v19 }
 0x16a   :  { %1733 = vmatpush3.bf16.msra.mxu0 %v1956_v62 }
 0x16b   :  { %1256 = vmatpush1.bf16.msra.mxu1 %v2383_v24  ;;  %1734 = vmatprep.subr.bf16.mxu0 %v1957_v2 }
 0x16c   :  { %1702 = vmatprep.subr.bf16.mxu1 %v1947_v45 }
 0x16e   :  { %1274 = vmatmul.mubr.bf16.vlgmr.msra.gmra.mrb[24].mxu1 %v459_v1  ;;  %1735 = vmatpush3.bf16.msra.mxu0 %v1958_v6 }
 0x16f   :  { %1703 = vmatpush3.bf16.msra.mxu1 %v1948_v48  ;;  %1736 = vmatprep.subr.bf16.mxu0 %v1959_v8 }
 0x170   :  { %1704 = vmatprep.subr.bf16.mxu1 %v1949_v49 }
 0x172   :  { %1737 = vmatpush3.bf16.msra.mxu0 %v1960_v9 }
 0x173   :  { %1705 = vmatpush3.bf16.msra.mxu1 %v1950_v50  ;;  %1738 = vmatprep.subr.bf16.mxu0 %v1961_v10 }
 0x174   :  { %1706 = vmatprep.subr.bf16.mxu1 %v1951_v52 }
 0x176   :  { %1739 = vmatpush3.bf16.msra.mxu0 %v1962_v11 }
 0x177   :  { %1707 = vmatpush3.bf16.msra.mxu1 %v1952_v55 }
 0x178   :  { %1708 = vmatprep.subr.bf16.mxu1 %v1953_v58 }
 0x17b   :  { %1709 = vmatpush3.bf16.msra.mxu1 %v1954_v59 }
 0x17c   :  { %1710 = vmatprep.subr.bf16.mxu1 %v1955_v61  ;;  %v1522_v61 = vstv %s2565_s0 }
 0x17d   :  { %vm1523_vm3 = vcmp.lt.s32.totalorder %v2254_v27, %v1522_v61 }
 0x17f   :  { %1711 = vmatpush3.bf16.msra.mxu1 %v1956_v62 }
 0x180   :  { %1712 = vmatprep.subr.bf16.mxu1 %v1957_v2 }
 0x183   :  { %1713 = vmatpush3.bf16.msra.mxu1 %v1958_v6 }
 0x184   :  { %1714 = vmatprep.subr.bf16.mxu1 %v1959_v8 }
 0x187   :  { %1715 = vmatpush3.bf16.msra.mxu1 %v1960_v9 }
 0x188   :  { %1716 = vmatprep.subr.bf16.mxu1 %v1961_v10 }
 0x18b   :  { %1717 = vmatpush3.bf16.msra.mxu1 %v1962_v11 }
 0x1cc   :  { %v830_v12 = vpop.f32.mrb[8].mxu0 }
 0x1cd   :  { %v832_v13 = vpop.f32.mrb[9].mxu0 }
 0x1ce   :  { %v834_v14 = vpop.f32.mrb[10].mxu0 }
 0x1cf   :  { %v835_v16 = vpop.f32.mrb[11].mxu0 }
 0x1e1   :  { %v871_v17 = vpop.f32.mrb[16].mxu1 }
 0x1e2   :  { %v872_v18 = vadd.f32 %v871_v17, %v830_v12  ;;  %v873_v19 = vpop.f32.mrb[17].mxu1 }
 0x1e3   :  { %v874_v20 = vadd.f32 %v873_v19, %v832_v13  ;;  %v875_v21 = vpop.f32.mrb[18].mxu1 }
 0x1e4   :  { %v876_v22 = vpop.f32.mrb[19].mxu1 }
 0x1ec   :  { %v1193_v23 = vpop.f32.mrb[12].mxu0 }
 0x1ed   :  { %v1195_v24 = vpop.f32.mrb[13].mxu0 }
 0x1ee   :  { %v1197_v25 = vpop.f32.mrb[14].mxu0 }
 0x1ef   :  { %v1198_v26 = vpop.f32.mrb[15].mxu0 }
 0x221   :  { %v1152_v29 = vpop.f32.mrb[20].mxu1 }
 0x222   :  { %v1153_v31 = vadd.f32 %v1152_v29, %v872_v18  ;;  %v1154_v32 = vpop.f32.mrb[21].mxu1 }
 0x223   :  { %v1155_v33 = vadd.f32 %v1154_v32, %v874_v20  ;;  %v1156_v15 = vpop.f32.mrb[22].mxu1 }
 0x224   :  { %v1194_v34 = vadd.f32 %v1193_v23, %v1153_v31  ;;  %v1157_v35 = vpop.f32.mrb[23].mxu1 }
 0x225   :  { %v1196_v36 = vadd.f32 %v1195_v24, %v1155_v33 }
 0x22c   :  { %v1234_v37 = vpop.f32.mrb[16].mxu0 }
 0x22d   :  { %v1236_v38 = vpop.f32.mrb[17].mxu0 }
 0x22e   :  { %v1238_v39 = vpop.f32.mrb[18].mxu0 }
 0x22f   :  { %v1239_v40 = vpop.f32.mrb[19].mxu0 }
 0x241   :  { %v1275_v42 = vpop.f32.mrb[24].mxu1 }
 0x242   :  { %v1276_v43 = vadd.f32 %v1275_v42, %v1234_v37  ;;  %v1277_v46 = vpop.f32.mrb[25].mxu1 }
 0x243   :  { %v1278_v47 = vadd.f32 %v1277_v46, %v1236_v38  ;;  %v1279_v53 = vpop.f32.mrb[26].mxu1 }
 0x244   :  { %v1282_v54 = vadd.f32 %v1276_v43, %v1194_v34  ;;  %v1280_v56 = vpop.f32.mrb[27].mxu1 }
 0x245   :  { %v1283_v57 = vadd.f32 %v1278_v47, %v1196_v36 }
 0x246   :  { %v1296_v60 = vadd.f32 %v1289_v44, %v1282_v54 }
 0x247   :  { %v1297_v63 = vadd.f32 %v1293_v51, %v1283_v57 }
 0x248   :  { %v1298_v0 = vmax.f32 %v1296_v60, 0.0 }
 0x249   :  { %v1299_v3 = vmax.f32 %v1297_v63, 0.0 }
 0x24a   :  { %v1300_v5 = vpack.c.bf16 %v1298_v0, %v1298_v0 }
 0x24b   :  { %v1301_v7 = vpack.c.bf16 %v1299_v3, %v1299_v3 }
 0x24c   :  { %v1302_v4 = vunpack.c.l.bf16 %v1300_v5 }
 0x24d   :  { %v1303_v1 = vunpack.c.l.bf16 %v1301_v7  ;;  %1508 = vmatprep.mubr.bf16.mxu0 %v1301_v7 }
 0x24e   :  { %v1304_v45 = vsub.f32 %v1298_v0, %v1302_v4  ;;  %1509 = vmatmul.mubr.bf16.vlgmr.msra.gmra.mrb[20].mxu0 %v1300_v5 }
 0x24f   :  { %v1305_v28 = vsub.f32 %v1299_v3, %v1303_v1 }
 0x250   :  { %v1306_v49 = vpack.c.bf16 %v1304_v45, %v1304_v45 }
 0x251   :  { %v1307_v48 = vpack.c.bf16 %v1305_v28, %v1305_v28 }
 0x253   :  { %1468 = vmatprep.mubr.bf16.mxu1 %v1307_v48 }
 0x254   :  { %1469 = vmatmul.mubr.bf16.vlgmr.msra.gmra.mrb[28].mxu1 %v1306_v49 }
 0x321   :  { %v1740_v30 = vpop.f32.mrb[20].mxu0 }
 0x322   :  { %v1741_v50 = vpop.f32.mrb[21].mxu0 }
 0x323   :  { %v1742_v52 = vadd.f32 %v1741_v50, %v1740_v30  ;;  %v1743_v55 = vpop.f32.mrb[22].mxu0 }
 0x324   :  { %v1744_v58 = vpop.f32.mrb[23].mxu0 }
 0x327   :  { %v1718_v59 = vpop.f32.mrb[28].mxu1 }
 0x328   :  { %v1719_v62 = vpop.f32.mrb[29].mxu1 }
 0x329   :  { %v1720_v2 = vadd.f32 %v1719_v62, %v1718_v59  ;;  %v1721_v6 = vpop.f32.mrb[30].mxu1 }
 0x32a   :  { %v1722_v8 = vpop.f32.mrb[31].mxu1 }
 0x32b   :  { %v1511_v9 = vadd.f32 %v1742_v52, %v1720_v2 }
 0x32d   :  { %1516 = vst [vmem:[%s2566_s9] sm:$0xff] %v1511_v9  ;;  %v1524_v10 = vsel %vm1523_vm3, %v1511_v9, 0.0 }
 0x32e   :  { %v1525_v11 = vrot.slane %v1524_v10, 4  ;;  %v1531_v12 = vmul.f32 %v1524_v10, %v1524_v10 }
 0x330   :  { %v1526_v13 = vadd.f32 %v1525_v11, %v1524_v10  ;;  %v1532_v14 = vrot.slane %v1531_v12, 4 }
 0x332   :  { %v1527_v16 = vrot.slane %v1526_v13, 2  ;;  %v1533_v17 = vadd.f32 %v1532_v14, %v1531_v12 }
 0x334   :  { %v1528_v18 = vadd.f32 %v1527_v16, %v1526_v13  ;;  %v1534_v19 = vrot.slane %v1533_v17, 2 }
 0x336   :  { %v1529_v20 = vrot.slane %v1528_v18, 1  ;;  %v1535_v21 = vadd.f32 %v1534_v19, %v1533_v17 }
 0x338   :  { %v1536_v22 = vrot.slane %v1535_v21, 1  ;;  %v1530_v27 = vadd.f32 %v1529_v20, %v1528_v18 }
 0x33a   :  { %v1537_v23 = vadd.f32 %v1536_v22, %v1535_v21 }
 0x33c   :  { %v1539_v24 = vsel %vm1538_vm4, %v1530_v27, %v1537_v23 }
 0x33d   :  { %v1541_v25 = vsel %vm1540_vm5, %v1539_v24, 0.0 }
 0x33e   :  { %1542 = vst [vmem:[%s2567_s10] sm:$0xff] %v1541_v25 }

// kernel: net_forward.3
= control target key start
LH: loop header
LB: loop body
LE: loop exit
PB: predicated region body
PF: predicated region fallthrough
CT: control target
= control target key end

     0   :  { %v2312_v0 = vmov 0.0|0.0   ;;  %vm2313_vm0 = vmmov 0   ;;  %v2314_v10 = vmov 0.0   ;;  %vm702_vm1 = vcmask 261120   ;;  %s2738_s1 = inlined_call_operand.vmem [shape: f32[128,32], index: 1, kind: input, shape index: {}]   ;;  %s2739_s0 = inlined_call_operand.vmem [shape: f32[8,128], index: 0, kind: input, shape index: {}]   ;;  %s2740_s3 = inlined_call_operand.vmem [shape: f32[32,8], index: 3, kind: input, shape index: {}]   ;;  %s2741_s2 = inlined_call_operand.vmem [shape: f32[1,32], index: 2, kind: input, shape index: {}]   ;;  %s2742_s5 = inlined_call_operand.vmem [shape: f32[8,8], index: 5, kind: input, shape index: {}]   ;;  %s2743_s4 = inlined_call_operand.vmem [shape: f32[1,8], index: 4, kind: input, shape index: {}]   ;;  %s2744_s6 = inlined_call_operand.vmem [shape: f32[1,8], index: 6, kind: input, shape index: {}]   ;;  %s2745_s7 = inlined_call_operand.vmem [shape: f32[8,8], index: 7, kind: output, shape index: {}]  }
   0x1   :  { %2156 = vmatprep.subr.bf16.mxu0 %v2312_v0  ;;  %v27_v1 = vld [vmem:[%s2738_s1] sm:$0xff]  ;;  %v28_v2 = vld [vmem:[%s2738_s1 + $0x8] sm:$0xff]  ;;  %v29_v3 = vld [vmem:[%s2738_s1 + $0x10] sm:$0xff]  ;;  %2108 = vmatprep.subr.bf16.mxu1 %v2312_v0  ;;  %vm1199_vm2 = vcmask 64512  }
   0x2   :  { %v51_v4 = vand.u32 4294901760, %v27_v1  ;;  %v54_v5 = vand.u32 4294901760, %v28_v2  ;;  %v30_v6 = vld [vmem:[%s2738_s1 + $0x18] sm:$0xff]  ;;  %v57_v7 = vand.u32 4294901760, %v29_v3  ;;  %v31_v8 = vld [vmem:[%s2738_s1 + $0x20] sm:$0xff]  ;;  %v32_v9 = vld [vmem:[%s2738_s1 + $0x28] sm:$0xff]  ;;  %1904 = vmatprep.mubr.msk.f32.mxu0 %vm2313_vm0, %v2314_v10  ;;  %1834 = vmatprep.mubr.msk.f32.mxu1 %vm2313_vm0, %v2314_v10 }
   0x3   :  { %v60_v11 = vand.u32 4294901760, %v30_v6  ;;  %v63_v12 = vand.u32 4294901760, %v31_v8  ;;  %v66_v16 = vand.u32 4294901760, %v32_v9  ;;  %v33_v17 = vld [vmem:[%s2738_s1 + $0x30] sm:$0xff]  ;;  %v34_v19 = vld [vmem:[%s2738_s1 + $0x38] sm:$0xff]  ;;  %v35_v26 = vld [vmem:[%s2738_s1 + $0x40] sm:$0xff] }
   0x4   :  { %v2379_v13 = vsub.f32 %v27_v1, %v51_v4  ;;  %v2381_v14 = vsub.f32 %v28_v2, %v54_v5  ;;  %v2383_v15 = vsub.f32 %v29_v3, %v57_v7  ;;  %v69_v21 = vand.u32 4294901760, %v33_v17  ;;  %v36_v27 = vld [vmem:[%s2738_s1 + $0x48] sm:$0xff]  ;;  %v37_v34 = vld [vmem:[%s2738_s1 + $0x50] sm:$0xff]  ;;  %v38_v35 = vld [vmem:[%s2738_s1 + $0x58] sm:$0xff] }
   0x5   :  { %v2388_v18 = vsub.f32 %v30_v6, %v60_v11  ;;  %v2397_v23 = vsub.f32 %v31_v8, %v63_v12  ;;  %v2399_v24 = vsub.f32 %v32_v9, %v66_v16  ;;  %v72_v25 = vand.u32 4294901760, %v34_v19  ;;  %v39_v42 = vld [vmem:[%s2738_s1 + $0x60] sm:$0xff]  ;;  %v40_v43 = vld [vmem:[%s2738_s1 + $0x68] sm:$0xff]  ;;  %v41_v50 = vld [vmem:[%s2738_s1 + $0x70] sm:$0xff] }
   0x6   :  { %v2157_v20 = vpack.c.bf16 %v2381_v14, %v2379_v13  ;;  %v2408_v28 = vsub.f32 %v33_v17, %v69_v21  ;;  %v2410_v29 = vpack.c.bf16 %v54_v5, %v51_v4  ;;  %v75_v32 = vand.u32 4294901760, %v35_v26  ;;  %v42_v51 = vld [vmem:[%s2738_s1 + $0x78] sm:$0xff]  ;;  %v26_v54 = vld [vmem:[%s2739_s0] sm:$0xff] }
   0x7   :  { %v2160_v22 = vpack.c.bf16 %v2388_v18, %v2383_v15  ;;  %v2163_v30 = vpack.c.bf16 %v2399_v24, %v2397_v23  ;;  %v2414_v31 = vsub.f32 %v34_v19, %v72_v25  ;;  %v78_v33 = vand.u32 4294901760, %v36_v27 }
   0x8   :  { %2158 = vmatpush3.bf16.msra.mxu0 %v2157_v20  ;;  %2110 = vmatpush3.bf16.msra.mxu1 %v2410_v29  ;;  %v2424_v36 = vpack.c.bf16 %v60_v11, %v57_v7  ;;  %v81_v37 = vand.u32 4294901760, %v37_v34  ;;  %v2429_v39 = vsub.f32 %v35_v26, %v75_v32  ;;  %v84_v41 = vand.u32 4294901760, %v38_v35 }
   0x9   :  { %2159 = vmatprep.subr.bf16.mxu0 %v2312_v0  ;;  %2111 = vmatprep.subr.bf16.mxu1 %v2312_v0  ;;  %v2166_v38 = vpack.c.bf16 %v2414_v31, %v2408_v28  ;;  %v2431_v40 = vsub.f32 %v36_v27, %v78_v33  ;;  %v2441_v44 = vpack.c.bf16 %v66_v16, %v63_v12  ;;  %v87_v45 = vand.u32 4294901760, %v39_v42 }
   0xa   :  { %v2446_v47 = vsub.f32 %v37_v34, %v81_v37  ;;  %v2448_v48 = vsub.f32 %v38_v35, %v84_v41  ;;  %v90_v49 = vand.u32 4294901760, %v40_v43  ;;  %v2458_v52 = vpack.c.bf16 %v72_v25, %v69_v21 }
   0xb   :  { %v2169_v46 = vpack.c.bf16 %v2431_v40, %v2429_v39  ;;  %v93_v53 = vand.u32 4294901760, %v41_v50  ;;  %v2466_v56 = vsub.f32 %v39_v42, %v87_v45  ;;  %v96_v58 = vand.u32 4294901760, %v42_v51 }
   0xc   :  { %2161 = vmatpush3.bf16.msra.mxu0 %v2160_v22  ;;  %2113 = vmatpush3.bf16.msra.mxu1 %v2424_v36  ;;  %v2172_v55 = vpack.c.bf16 %v2448_v48, %v2446_v47  ;;  %v2468_v57 = vsub.f32 %v40_v43, %v90_v49  ;;  %v2472_v59 = vpack.c.bf16 %v78_v33, %v75_v32  ;;  %v2474_v60 = vand.u32 4294901760, %v26_v54 }
   0xd   :  { %2162 = vmatprep.subr.bf16.mxu0 %v2312_v0  ;;  %2114 = vmatprep.subr.bf16.mxu1 %v2312_v0  ;;  %v2479_v62 = vsub.f32 %v41_v50, %v93_v53  ;;  %v2481_v63 = vsub.f32 %v42_v51, %v96_v58  ;;  %v144_v1 = vand.u32 4294901760, %v2379_v13  ;;  %v151_v2 = vand.u32 4294901760, %v2381_v14 }
   0xe   :  { %v2175_v61 = vpack.c.bf16 %v2468_v57, %v2466_v56  ;;  %v2487_v3 = vpack.c.bf16 %v84_v41, %v81_v37  ;;  %v2490_v4 = vsub.f32 %v26_v54, %v2474_v60  ;;  %v158_v7 = vand.u32 4294901760, %v2383_v15 }
   0xf   :  { %v2178_v5 = vpack.c.bf16 %v2481_v63, %v2479_v62  ;;  %v2499_v8 = vpack.c.bf16 %v90_v49, %v87_v45  ;;  %v145_v9 = vsub.f32 %v2379_v13, %v144_v1  ;;  %v152_v11 = vsub.f32 %v2381_v14, %v151_v2 }
  0x10   :  { %2164 = vmatpush3.bf16.msra.mxu0 %v2163_v30  ;;  %2116 = vmatpush3.bf16.msra.mxu1 %v2441_v44  ;;  %v133_v6 = vand.u32 4294901760, %v2490_v4  ;;  %v165_v12 = vand.u32 4294901760, %v2388_v18  ;;  %v2509_v16 = vpack.c.bf16 %v96_v58, %v93_v53  ;;  %v172_v19 = vand.u32 4294901760, %v2397_v23 }
  0x11   :  { %2165 = vmatprep.subr.bf16.mxu0 %v2312_v0  ;;  %2117 = vmatprep.subr.bf16.mxu1 %v2312_v0  ;;  %v179_v20 = vand.u32 4294901760, %v2399_v24  ;;  %v146_v21 = vand.u32 4294901760, %v145_v9  ;;  %v153_v22 = vand.u32 4294901760, %v152_v11  ;;  %v159_v25 = vsub.f32 %v2383_v15, %v158_v7 }
  0x12   :  { %v134_v17 = vsub.f32 %v2490_v4, %v133_v6  ;;  %v166_v26 = vsub.f32 %v2388_v18, %v165_v12  ;;  %v173_v30 = vsub.f32 %v2397_v23, %v172_v19  ;;  %v186_v33 = vand.u32 4294901760, %v2408_v28 }
  0x13   :  { %v180_v32 = vsub.f32 %v2399_v24, %v179_v20  ;;  %v2133_v34 = vpack.c.bf16 %v153_v22, %v146_v21  ;;  %v160_v35 = vand.u32 4294901760, %v159_v25  ;;  %v200_v49 = vand.u32 4294901760, %v2429_v39 }
  0x14   :  { %2167 = vmatpush3.bf16.msra.mxu0 %v2166_v38  ;;  %2119 = vmatpush3.bf16.msra.mxu1 %v2458_v52  ;;  %v135_v27 = vand.u32 4294901760, %v134_v17  ;;  %v167_v37 = vand.u32 4294901760, %v166_v26  ;;  %v193_v38 = vand.u32 4294901760, %v2414_v31  ;;  %v174_v41 = vand.u32 4294901760, %v173_v30 }
  0x15   :  { %2168 = vmatprep.subr.bf16.mxu0 %v2312_v0  ;;  %2120 = vmatprep.subr.bf16.mxu1 %v2312_v0  ;;  %v181_v42 = vand.u32 4294901760, %v180_v32  ;;  %v187_v43 = vsub.f32 %v2408_v28, %v186_v33  ;;  %v207_v50 = vand.u32 4294901760, %v2431_v40  ;;  %v214_v54 = vand.u32 4294901760, %v2446_v47  ;;  %v691_v28 = vld [vmem:[%s2740_s3] sm:$0xff] }
  0x16   :  { %v2136_v45 = vpack.c.bf16 %v167_v37, %v160_v35  ;;  %v201_v58 = vsub.f32 %v2429_v39, %v200_v49  ;;  %v228_v11 = vand.u32 4294901760, %v2466_v56  ;;  %v235_v17 = vand.u32 4294901760, %v2468_v57 }
  0x17   :  { %v2139_v51 = vpack.c.bf16 %v181_v42, %v174_v41  ;;  %v188_v53 = vand.u32 4294901760, %v187_v43  ;;  %v215_v9 = vsub.f32 %v2446_v47, %v214_v54  ;;  %v242_v32 = vand.u32 4294901760, %v2479_v62  ;;  %v693_v47 = vld [vmem:[%s2740_s3 + $0x10] sm:$0xff] }
  0x18   :  { %2170 = vmatpush3.bf16.msra.mxu0 %v2169_v46  ;;  %2122 = vmatpush3.bf16.msra.mxu1 %v2472_v59  ;;  %v194_v46 = vsub.f32 %v2414_v31, %v193_v38  ;;  %v202_v22 = vand.u32 4294901760, %v201_v58  ;;  %v229_v30 = vsub.f32 %v2466_v56, %v228_v11  ;;  %v236_v37 = vsub.f32 %v2468_v57, %v235_v17 }
  0x19   :  { %2171 = vmatprep.subr.bf16.mxu0 %v2312_v0  ;;  %2123 = vmatprep.subr.bf16.mxu1 %v2312_v0  ;;  %v249_v41 = vand.u32 4294901760, %v2481_v63  ;;  %v243_v42 = vsub.f32 %v2479_v62, %v242_v32  ;;  %v2205_v62 = vpack.c.bf16 %v151_v2, %v144_v1  ;;  %v2211_v13 = vpack.c.bf16 %v179_v20, %v172_v19 }
  0x1a   :  { %v2214_v14 = vpack.c.bf16 %v193_v38, %v186_v33  ;;  %v2217_v15 = vpack.c.bf16 %v207_v50, %v200_v49  ;;  %v2223_v23 = vpack.c.bf16 %v235_v17, %v228_v11  ;;  %v707_v31 = vand.u32 4294901760, %v691_v28 }
  0x1b   :  { %v2226_v24 = vpack.c.bf16 %v249_v41, %v242_v32 }
  0x1c   :  { %2173 = vmatpush3.bf16.msra.mxu0 %v2172_v55  ;;  %2125 = vmatpush3.bf16.msra.mxu1 %v2487_v3  ;;  %v195_v55 = vand.u32 4294901760, %v194_v46  ;;  %v237_v46 = vand.u32 4294901760, %v236_v37 }
  0x1d   :  { %2174 = vmatprep.subr.bf16.mxu0 %v2312_v0  ;;  %2126 = vmatprep.subr.bf16.mxu1 %v2312_v0 }
  0x1e   :  { %v2142_v21 = vpack.c.bf16 %v195_v55, %v188_v53  ;;  %v244_v55 = vand.u32 4294901760, %v243_v42  ;;  %v1191_v42 = vld [vmem:[%s2742_s5] sm:$0xff] }
  0x20   :  { %2176 = vmatpush3.bf16.msra.mxu0 %v2175_v61  ;;  %2128 = vmatpush3.bf16.msra.mxu1 %v2499_v8  ;;  %v208_v61 = vsub.f32 %v2431_v40, %v207_v50  ;;  %v787_v40 = vsub.f32 %v691_v28, %v707_v31 }
  0x21   :  { %2177 = vmatprep.subr.bf16.mxu0 %v2312_v0  ;;  %2129 = vmatprep.subr.bf16.mxu1 %v2312_v0 }
  0x22   :  { %v209_v25 = vand.u32 4294901760, %v208_v61  ;;  %v2208_v61 = vpack.c.bf16 %v165_v12, %v158_v7  ;;  %v788_v57 = vand.u32 4294901760, %v787_v40 }
  0x24   :  { %2179 = vmatpush3.bf16.msra.mxu0 %v2178_v5  ;;  %2131 = vmatpush3.bf16.msra.mxu1 %v2509_v16  ;;  %v221_v5 = vand.u32 4294901760, %v2448_v48 }
  0x25   :  { %2180 = vmatprep.subr.bf16.mxu0 %v2312_v0  ;;  %2132 = vmatprep.subr.bf16.mxu1 %v2312_v0 }
  0x26   :  { %v222_v26 = vsub.f32 %v2448_v48, %v221_v5  ;;  %v2220_v18 = vpack.c.bf16 %v221_v5, %v214_v54  ;;  %v694_v48 = vld [vmem:[%s2740_s3 + $0x18] sm:$0xff] }
  0x27   :  { %1905 = vmatmul.mubr.f32.vlgmr.msra.gmra.mrb[0].mxu0 %v2490_v4  ;;  %1835 = vmatmul.mubr.f32.vlgmr.msra.gmra.mrb[0].mxu1 %v135_v27  ;;  %v216_v27 = vand.u32 4294901760, %v215_v9  ;;  %v716_v56 = vand.u32 4294901760, %v694_v48 }
  0x28   :  { %2182 = vmatpush3.bf16.msra.mxu0 %v2410_v29  ;;  %1939 = vmatprep.mubr.msk.f32.mxu0 %vm2313_vm0, %v2314_v10  ;;  %v223_v35 = vand.u32 4294901760, %v222_v26 }
  0x29   :  { %2183 = vmatprep.subr.bf16.mxu0 %v2312_v0  ;;  %2134 = vmatpush3.bf16.msra.mxu1 %v2133_v34  ;;  %v2145_v34 = vpack.c.bf16 %v209_v25, %v202_v22  ;;  %v808_v2 = vsub.f32 %v694_v48, %v716_v56 }
  0x2a   :  { %2135 = vmatprep.subr.bf16.mxu1 %v2312_v0  ;;  %1869 = vmatprep.mubr.msk.f32.mxu1 %vm2313_vm0, %v2314_v10  ;;  %v2148_v43 = vpack.c.bf16 %v223_v35, %v216_v27 }
  0x2c   :  { %2185 = vmatpush3.bf16.msra.mxu0 %v2424_v36 }
  0x2d   :  { %2186 = vmatprep.subr.bf16.mxu0 %v2312_v0  ;;  %2137 = vmatpush3.bf16.msra.mxu1 %v2136_v45  ;;  %v230_v45 = vand.u32 4294901760, %v229_v30 }
  0x2e   :  { %2138 = vmatprep.subr.bf16.mxu1 %v2312_v0 }
  0x2f   :  { %v2151_v53 = vpack.c.bf16 %v237_v46, %v230_v45 }
  0x30   :  { %2188 = vmatpush3.bf16.msra.mxu0 %v2441_v44 }
  0x31   :  { %2189 = vmatprep.subr.bf16.mxu0 %v2312_v0  ;;  %2140 = vmatpush3.bf16.msra.mxu1 %v2139_v51  ;;  %v250_v51 = vsub.f32 %v2481_v63, %v249_v41 }
  0x32   :  { %2141 = vmatprep.subr.bf16.mxu1 %v2312_v0 }
  0x33   :  { %v251_v58 = vand.u32 4294901760, %v250_v51 }
  0x34   :  { %2191 = vmatpush3.bf16.msra.mxu0 %v2458_v52 }
  0x35   :  { %2192 = vmatprep.subr.bf16.mxu0 %v2312_v0  ;;  %2143 = vmatpush3.bf16.msra.mxu1 %v2142_v21  ;;  %v2154_v63 = vpack.c.bf16 %v251_v58, %v244_v55  ;;  %v1655_v21 = vld [vmem:[%s2741_s2] ss:$0 sm:$0xff] }
  0x36   :  { %2144 = vmatprep.subr.bf16.mxu1 %v2312_v0 }
  0x38   :  { %2194 = vmatpush3.bf16.msra.mxu0 %v2472_v59 }
  0x39   :  { %2195 = vmatprep.subr.bf16.mxu0 %v2312_v0  ;;  %2146 = vmatpush3.bf16.msra.mxu1 %v2145_v34 }
  0x3a   :  { %2147 = vmatprep.subr.bf16.mxu1 %v2312_v0 }
  0x3c   :  { %2197 = vmatpush3.bf16.msra.mxu0 %v2487_v3 }
  0x3d   :  { %2198 = vmatprep.subr.bf16.mxu0 %v2312_v0  ;;  %2149 = vmatpush3.bf16.msra.mxu1 %v2148_v43  ;;  %v1204_v43 = vand.u32 4294901760, %v1191_v42 }
  0x3e   :  { %2150 = vmatprep.subr.bf16.mxu1 %v2312_v0 }
  0x3f   :  { %v1281_v45 = vsub.f32 %v1191_v42, %v1204_v43 }
  0x40   :  { %2200 = vmatpush3.bf16.msra.mxu0 %v2499_v8 }
  0x41   :  { %2201 = vmatprep.subr.bf16.mxu0 %v2312_v0  ;;  %2152 = vmatpush3.bf16.msra.mxu1 %v2151_v53  ;;  %v1282_v46 = vand.u32 4294901760, %v1281_v45 }
  0x42   :  { %2153 = vmatprep.subr.bf16.mxu1 %v2312_v0 }
  0x43   :  { %v1283_v51 = vsub.f32 %v1281_v45, %v1282_v46 }
  0x44   :  { %2203 = vmatpush3.bf16.msra.mxu0 %v2509_v16 }
  0x45   :  { %2204 = vmatprep.subr.bf16.mxu0 %v2312_v0  ;;  %2155 = vmatpush3.bf16.msra.mxu1 %v2154_v63  ;;  %v1284_v53 = vand.u32 4294901760, %v1283_v51 }
  0x46   :  { %2252 = vmatprep.subr.bf16.mxu1 %v2312_v0 }
  0x47   :  { %1940 = vmatmul.mubr.f32.vlgmr.msra.gmra.mrb[0].mxu0 %v133_v6 }
  0x48   :  { %2206 = vmatpush3.bf16.msra.mxu0 %v2205_v62  ;;  %1974 = vmatprep.mubr.msk.f32.mxu0 %vm2313_vm0, %v2314_v10 }
  0x49   :  { %2207 = vmatprep.subr.bf16.mxu0 %v2312_v0  ;;  %1870 = vmatmul.mubr.f32.vlgmr.msra.gmra.mrb[0].mxu1 %v2474_v60 }
  0x4a   :  { %2020 = vmatprep.mubr.msk.f32.mxu1 %vm2313_vm0, %v2314_v10 }
  0x4c   :  { %2209 = vmatpush3.bf16.msra.mxu0 %v2208_v61 }
  0x4d   :  { %2210 = vmatprep.subr.bf16.mxu0 %v2312_v0 }
  0x50   :  { %2212 = vmatpush3.bf16.msra.mxu0 %v2211_v13 }
  0x51   :  { %2213 = vmatprep.subr.bf16.mxu0 %v2312_v0 }
  0x54   :  { %2215 = vmatpush3.bf16.msra.mxu0 %v2214_v14 }
  0x55   :  { %2216 = vmatprep.subr.bf16.mxu0 %v2312_v0 }
  0x58   :  { %2218 = vmatpush3.bf16.msra.mxu0 %v2217_v15 }
  0x59   :  { %2219 = vmatprep.subr.bf16.mxu0 %v2312_v0 }
  0x5c   :  { %2221 = vmatpush3.bf16.msra.mxu0 %v2220_v18 }
  0x5d   :  { %2222 = vmatprep.subr.bf16.mxu0 %v2312_v0 }
  0x60   :  { %2224 = vmatpush3.bf16.msra.mxu0 %v2223_v23 }
  0x61   :  { %2225 = vmatprep.subr.bf16.mxu0 %v2312_v0 }
  0x64   :  { %2227 = vmatpush3.bf16.msra.mxu0 %v2226_v24 }
  0x65   :  { %2228 = vmatprep.subr.bf16.mxu0 %v2312_v0 }
  0x67   :  { %1975 = vmatmul.mubr.f32.vlgmr.msra.gmra.mrb[0].mxu0 %v2474_v60 }
  0x68   :  { %2230 = vmatpush3.bf16.msra.mxu0 %v2410_v29  ;;  %2009 = vmatprep.mubr.msk.f32.mxu0 %vm2313_vm0, %v2314_v10  ;;  %v692_v29 = vld [vmem:[%s2740_s3 + $0x8] sm:$0xff] }
  0x69   :  { %2231 = vmatprep.subr.bf16.mxu0 %v2312_v0 }
  0x6c   :  { %2233 = vmatpush3.bf16.msra.mxu0 %v2424_v36  ;;  %v710_v36 = vand.u32 4294901760, %v692_v29 }
  0x6d   :  { %2234 = vmatprep.subr.bf16.mxu0 %v2312_v0 }
  0x6e   :  { %v2669_v39 = vpack.c.bf16 %v710_v36, %v707_v31  ;;  %v1657_v31 = vld [vmem:[%s2744_s6] ss:$0 sm:$0xff] }
  0x70   :  { %2236 = vmatpush3.bf16.msra.mxu0 %v2441_v44  ;;  %v794_v44 = vsub.f32 %v692_v29, %v710_v36  ;;  %2254 = vmatpush3.bf16.msra.mxu1 %v2669_v39 }
  0x71   :  { %2237 = vmatprep.subr.bf16.mxu0 %v2312_v0  ;;  %2255 = vmatprep.subr.bf16.mxu1 %v2312_v0 }
  0x72   :  { %v2265_v50 = vpack.c.bf16 %v794_v44, %v787_v40 }
  0x74   :  { %2239 = vmatpush3.bf16.msra.mxu0 %v2458_v52  ;;  %v713_v52 = vand.u32 4294901760, %v693_v47 }
  0x75   :  { %2240 = vmatprep.subr.bf16.mxu0 %v2312_v0 }
  0x76   :  { %v801_v1 = vsub.f32 %v693_v47, %v713_v52 }
  0x78   :  { %2242 = vmatpush3.bf16.msra.mxu0 %v2472_v59  ;;  %v795_v59 = vand.u32 4294901760, %v794_v44  ;;  %v802_v7 = vand.u32 4294901760, %v801_v1  ;;  %v2268_v54 = vpack.c.bf16 %v808_v2, %v801_v1 }
  0x79   :  { %2243 = vmatprep.subr.bf16.mxu0 %v2312_v0 }
  0x7a   :  { %v796_v4 = vsub.f32 %v794_v44, %v795_v59  ;;  %v2277_v5 = vpack.c.bf16 %v795_v59, %v788_v57 }
  0x7c   :  { %2245 = vmatpush3.bf16.msra.mxu0 %v2487_v3  ;;  %v789_v3 = vsub.f32 %v787_v40, %v788_v57  ;;  %v797_v12 = vand.u32 4294901760, %v796_v4 }
  0x7d   :  { %2246 = vmatprep.subr.bf16.mxu0 %v2312_v0 }
  0x7e   :  { %v790_v6 = vand.u32 4294901760, %v789_v3 }
  0x80   :  { %2248 = vmatpush3.bf16.msra.mxu0 %v2499_v8  ;;  %v809_v8 = vand.u32 4294901760, %v808_v2  ;;  %v2259_v20 = vpack.c.bf16 %v797_v12, %v790_v6 }
  0x81   :  { %2249 = vmatprep.subr.bf16.mxu0 %v2312_v0 }
  0x82   :  { %v810_v19 = vsub.f32 %v808_v2, %v809_v8  ;;  %v2280_v9 = vpack.c.bf16 %v809_v8, %v802_v7 }
  0x84   :  { %2251 = vmatpush3.bf16.msra.mxu0 %v2509_v16  ;;  %v803_v16 = vsub.f32 %v801_v1, %v802_v7  ;;  %v811_v38 = vand.u32 4294901760, %v810_v19 }
  0x85   :  { %2078 = vmatprep.subr.mxu0 %v2314_v10 }
  0x86   :  { %v804_v33 = vand.u32 4294901760, %v803_v16 }
  0x87   :  { %2010 = vmatmul.mubr.f32.vlgmr.msra.gmra.mrb[0].mxu0 %v2474_v60  ;;  %v2679_v60 = vpack.c.bf16 %v716_v56, %v713_v52 }
  0x88   :  { %2080 = vmatprep.mubr.msk.f32.mxu0 %vm2313_vm0, %v2314_v10  ;;  %v2262_v49 = vpack.c.bf16 %v811_v38, %v804_v33  ;;  %2079 = vmatpush3.msra.mxu0 %v1204_v43 }
  0x89   :  { %2257 = vmatpush3.bf16.msra.mxu1 %v2679_v60 }
  0x8a   :  { %2258 = vmatprep.subr.bf16.mxu1 %v2312_v0 }
 0x11c   :  { %v288_v11 = vpop.f32.mrb[0].mxu1 }
 0x11d   :  { %v1871_v17 = vpop.f32.mrb[1].mxu1  ;;  %v2288_v22 = vadd.f32 %v1655_v21, %v288_v11 }
 0x15a   :  { %v687_v25 = vpop.f32.mrb[0].mxu0 }
 0x15b   :  { %v2289_v26 = vadd.f32 %v2288_v22, %v687_v25  ;;  %v2011_v27 = vpop.f32.mrb[1].mxu0 }
 0x15d   :  { %v704_v30 = vsel %vm702_vm1, %v2289_v26, 0 }
 0x15e   :  { %v775_v32 = vand.u32 4294901760, %v704_v30 }
 0x160   :  { %v776_v34 = vsub.f32 %v704_v30, %v775_v32 }
 0x162   :  { %v777_v35 = vand.u32 4294901760, %v776_v34 }
 0x164   :  { %v778_v37 = vsub.f32 %v776_v34, %v777_v35 }
 0x166   :  { %v779_v41 = vand.u32 4294901760, %v778_v37 }
 0x168   :  { %2021 = vmatmul.mubr.f32.vlgmr.msra.gmra.mrb[2].mxu1 %v779_v41 }
 0x169   :  { %2260 = vmatpush3.bf16.msra.mxu1 %v2259_v20  ;;  %2031 = vmatprep.mubr.msk.f32.mxu1 %vm2313_vm0, %v2314_v10 }
 0x16a   :  { %2261 = vmatprep.subr.bf16.mxu1 %v2312_v0 }
 0x16d   :  { %2263 = vmatpush3.bf16.msra.mxu1 %v2262_v49 }
 0x16e   :  { %2264 = vmatprep.subr.bf16.mxu1 %v2312_v0 }
 0x170   :  { %2032 = vmatmul.mubr.f32.vlgmr.msra.gmra.mrb[2].mxu1 %v775_v32 }
 0x171   :  { %2266 = vmatpush3.bf16.msra.mxu1 %v2265_v50  ;;  %2042 = vmatprep.mubr.msk.f32.mxu1 %vm2313_vm0, %v2314_v10 }
 0x172   :  { %2267 = vmatprep.subr.bf16.mxu1 %v2312_v0 }
 0x175   :  { %2269 = vmatpush3.bf16.msra.mxu1 %v2268_v54 }
 0x176   :  { %2270 = vmatprep.subr.bf16.mxu1 %v2312_v0 }
 0x178   :  { %2043 = vmatmul.mubr.f32.vlgmr.msra.gmra.mrb[2].mxu1 %v776_v34 }
 0x179   :  { %2272 = vmatpush3.bf16.msra.mxu1 %v2669_v39  ;;  %2053 = vmatprep.mubr.msk.f32.mxu1 %vm2313_vm0, %v2314_v10 }
 0x17a   :  { %2273 = vmatprep.subr.bf16.mxu1 %v2312_v0 }
 0x17d   :  { %2275 = vmatpush3.bf16.msra.mxu1 %v2679_v60 }
 0x17e   :  { %2276 = vmatprep.subr.bf16.mxu1 %v2312_v0 }
 0x180   :  { %2054 = vmatmul.mubr.f32.vlgmr.msra.gmra.mrb[2].mxu1 %v777_v35 }
 0x181   :  { %2278 = vmatpush3.bf16.msra.mxu1 %v2277_v5  ;;  %2064 = vmatprep.mubr.msk.f32.mxu1 %vm2313_vm0, %v2314_v10 }
 0x182   :  { %2279 = vmatprep.subr.bf16.mxu1 %v2312_v0 }
 0x185   :  { %2281 = vmatpush3.bf16.msra.mxu1 %v2280_v9 }
 0x186   :  { %2282 = vmatprep.subr.bf16.mxu1 %v2312_v0 }
 0x188   :  { %2065 = vmatmul.mubr.f32.vlgmr.msra.gmra.mrb[2].mxu1 %v775_v32 }
 0x189   :  { %2284 = vmatpush3.bf16.msra.mxu1 %v2669_v39  ;;  %2075 = vmatprep.mubr.msk.f32.mxu1 %vm2313_vm0, %v2314_v10 }
 0x18a   :  { %2285 = vmatprep.subr.bf16.mxu1 %v2312_v0  ;;  %v1656_v0 = vld [vmem:[%s2743_s4] ss:$0 sm:$0xff] }
 0x18d   :  { %2287 = vmatpush3.bf16.msra.mxu1 %v2679_v60 }
 0x18e   :  { %2083 = vmatprep.subr.mxu1 %v2314_v10 }
 0x190   :  { %2076 = vmatmul.mubr.f32.vlgmr.msra.gmra.mrb[2].mxu1 %v775_v32 }
 0x191   :  { %2085 = vmatprep.mubr.msk.f32.mxu1 %vm2313_vm0, %v2314_v10  ;;  %2084 = vmatpush3.msra.mxu1 %v1284_v53 }
 0x192   :  { %2088 = vmatprep.subr.mxu1 %v2314_v10 }
 0x263   :  { %v1187_v55 = vpop.f32.mrb[2].mxu1 }
 0x264   :  { %v2290_v58 = vadd.f32 %v1656_v0, %v1187_v55  ;;  %v2077_v62 = vpop.f32.mrb[3].mxu1 }
 0x266   :  { %v1201_v63 = vsel %vm1199_vm2, %v2290_v58, 0 }
 0x267   :  { %v1269_v61 = vand.u32 4294901760, %v1201_v63 }
 0x269   :  { %v1270_v13 = vsub.f32 %v1201_v63, %v1269_v61  ;;  %2086 = vmatmul.mubr.f32.vlgmr.msra.gmra.mrb[4].mxu1 %v1269_v61 }
 0x26a   :  { %2089 = vmatpush3.msra.mxu1 %v1281_v45  ;;  %2090 = vmatprep.mubr.msk.f32.mxu1 %vm2313_vm0, %v2314_v10 }
 0x26b   :  { %v1271_v14 = vand.u32 4294901760, %v1270_v13  ;;  %2093 = vmatprep.subr.mxu1 %v2314_v10 }
 0x26d   :  { %2091 = vmatmul.mubr.f32.vlgmr.msra.gmra.mrb[6].mxu1 %v1270_v13  ;;  %v1272_v15 = vsub.f32 %v1270_v13, %v1271_v14 }
 0x26e   :  { %2094 = vmatpush3.msra.mxu1 %v1204_v43  ;;  %2095 = vmatprep.mubr.msk.f32.mxu1 %vm2313_vm0, %v2314_v10 }
 0x26f   :  { %v1273_v18 = vand.u32 4294901760, %v1272_v15  ;;  %2098 = vmatprep.subr.mxu1 %v2314_v10 }
 0x271   :  { %2081 = vmatmul.mubr.f32.vlgmr.msra.gmra.mrb[2].mxu0 %v1273_v18  ;;  %2096 = vmatmul.mubr.f32.vlgmr.msra.gmra.mrb[8].mxu1 %v1271_v14 }
 0x272   :  { %2099 = vmatpush3.msra.mxu1 %v1282_v46  ;;  %2100 = vmatprep.mubr.msk.f32.mxu1 %vm2313_vm0, %v2314_v10 }
 0x273   :  { %2103 = vmatprep.subr.mxu1 %v2314_v10 }
 0x275   :  { %2101 = vmatmul.mubr.f32.vlgmr.msra.gmra.mrb[10].mxu1 %v1269_v61 }
 0x276   :  { %2104 = vmatpush3.msra.mxu1 %v1204_v43  ;;  %2105 = vmatprep.mubr.msk.f32.mxu1 %vm2313_vm0, %v2314_v10 }
 0x279   :  { %2106 = vmatmul.mubr.f32.vlgmr.msra.gmra.mrb[12].mxu1 %v1269_v61 }
 0x33c   :  { %v1351_v23 = vpop.f32.mrb[4].mxu1 }
 0x33d   :  { %v2087_v24 = vpop.f32.mrb[5].mxu1 }
 0x340   :  { %v1425_v28 = vpop.f32.mrb[6].mxu1 }
 0x341   :  { %v2092_v29 = vpop.f32.mrb[7].mxu1 }
 0x344   :  { %v1275_v36 = vpop.f32.mrb[2].mxu0  ;;  %v1499_v39 = vpop.f32.mrb[8].mxu1 }
 0x345   :  { %v1276_v40 = vadd.f32 %v1657_v31, %v1275_v36  ;;  %v2082_v44 = vpop.f32.mrb[3].mxu0  ;;  %v2097_v47 = vpop.f32.mrb[9].mxu1 }
 0x347   :  { %v1352_v48 = vadd.f32 %v1351_v23, %v1276_v40 }
 0x348   :  { %v1573_v52 = vpop.f32.mrb[10].mxu1 }
 0x349   :  { %v1426_v56 = vadd.f32 %v1425_v28, %v1352_v48  ;;  %v2102_v57 = vpop.f32.mrb[11].mxu1 }
 0x34b   :  { %v1500_v59 = vadd.f32 %v1499_v39, %v1426_v56 }
 0x34c   :  { %v1645_v10 = vpop.f32.mrb[12].mxu1 }
 0x34d   :  { %v1574_v60 = vadd.f32 %v1573_v52, %v1500_v59  ;;  %v2107_v1 = vpop.f32.mrb[13].mxu1 }
 0x34f   :  { %v1646_v2 = vadd.f32 %v1645_v10, %v1574_v60 }
 0x351   :  { %v1649_v3 = vadd.f32 %v2290_v58, %v1646_v2 }
 0x353   :  { %1650 = vst.msk [vmem:[%s2745_s7] sm:$0xff] %vm1199_vm2, %v1649_v3 }

</bundles_post_ra>
